<compile_context>
chip_gen: v6e
topology: v6e:2x2x1
jax: 0.10.0
libtpu: 0.0.40
codegen_flags: <defaults>
</compile_context>

<pallas_src>
import jax
import jax.numpy as jnp
import numpy as np
from jax import lax
from jax.experimental import pallas as pl
from jax.experimental.pallas import tpu as pltpu

LN_EPS = 1e-5
NEG_INF = -1e30


def _layer_norm(x, gamma, beta):
    mu = jnp.mean(x, axis=-1, keepdims=True)
    var = jnp.mean((x - mu) ** 2, axis=-1, keepdims=True)
    return (x - mu) * jax.lax.rsqrt(var + LN_EPS) * gamma + beta


# ---------------------------------------------------------------------------
# Kernel: one grid step = one (batch row, encoder layer).
# ---------------------------------------------------------------------------
def _encoder_layer_kernel(
    x_ref,            # (1, S, D)     f32  embedded tokens for this batch row
    bias_ref,         # (1, 1, S)     f32  additive key-padding bias
    wq_ref, bq_ref,   # (1, H, D, hd) bf16 / (1, H, 1, hd) f32 (1/sqrt(hd) folded)
    wk_ref, bk_ref,   # (1, H, D, hd) bf16 / (1, H, 1, hd) f32
    wv_ref, bv_ref,   # (1, H, D, hd) bf16 / (1, H, 1, hd) f32
    wo_ref, bo_ref,   # (1, H, hd, D) bf16 / (1, 1, D) f32
    w1_ref, b1_ref,   # (1, D, FF)    bf16 / (1, 1, FF) f32
    w2_ref, b2_ref,   # (1, FF, D)    bf16 / (1, 1, D) f32
    g1_ref, be1_ref,  # (1, 1, D)     f32  (LayerNorm1)
    g2_ref, be2_ref,  # (1, 1, D)     f32  (LayerNorm2)
    o_ref,            # (1, S, D)     f32  accumulator, resident across layers
):
    f32 = jnp.float32
    bf16 = jnp.bfloat16
    H = wq_ref.shape[1]
    S = x_ref.shape[1]
    D = x_ref.shape[2]

    # Layer 0: seed the resident activation from the embeddings.
    @pl.when(pl.program_id(1) == 0)
    def _():
        o_ref[...] = x_ref[...]

    x = o_ref[0]                                   # (S, D) f32
    xb = x.astype(bf16)
    xh = jnp.broadcast_to(xb[None], (H, S, D))     # (H, S, D), hoisted once

    dn_proj = (((2,), (1,)), ((0,), (0,)))         # (H,S,D) x (H,D,hd) -> (H,S,hd)
    qh = lax.dot_general(xh, wq_ref[0], dn_proj, preferred_element_type=f32) + bq_ref[0]
    kh = lax.dot_general(xh, wk_ref[0], dn_proj, preferred_element_type=f32) + bk_ref[0]
    vh = lax.dot_general(xh, wv_ref[0], dn_proj, preferred_element_type=f32) + bv_ref[0]

    # Scores for all heads in one batched matmul; key-padding bias broadcasts
    # over heads and query rows (no (N,N) bias anywhere).
    s = lax.dot_general(qh.astype(bf16), kh.astype(bf16),
                        (((2,), (2,)), ((0,), (0,))),
                        preferred_element_type=f32)            # (H, S, S)
    s = s + bias_ref[...]                                      # (1,1,S) broadcast
    s = s - jnp.max(s, axis=-1, keepdims=True)                 # one reduce, all heads
    e = jnp.exp(s)
    p = e * pl.reciprocal(jnp.sum(e, axis=-1, keepdims=True), approx=True)

    hv = lax.dot_general(p.astype(bf16), vh.astype(bf16),
                         (((2,), (1,)), ((0,), (0,))),
                         preferred_element_type=f32)           # (H, S, hd)

    # Out-projection: head-batched (hd, D) slabs, then sum over heads.
    oh = lax.dot_general(hv.astype(bf16), wo_ref[0],
                         (((2,), (1,)), ((0,), (0,))),
                         preferred_element_type=f32)           # (H, S, D)
    attn = jnp.sum(oh, axis=0) + bo_ref[0]                     # (S, D)

    # residual + LayerNorm 1
    x = _layer_norm(x + attn, g1_ref[0], be1_ref[0])

    # feed-forward (ReLU), wide (S,D)x(D,FF) / (S,FF)x(FF,D) matmuls
    hdn = jnp.dot(x.astype(bf16), w1_ref[0], preferred_element_type=f32) + b1_ref[0]
    hdn = jnp.maximum(hdn, 0.0)
    ff = jnp.dot(hdn.astype(bf16), w2_ref[0], preferred_element_type=f32) + b2_ref[0]

    # residual + LayerNorm 2 -> stays resident for the next layer step
    o_ref[0] = _layer_norm(x + ff, g2_ref[0], be2_ref[0])


# ---------------------------------------------------------------------------
# Parameter prep: stack layers, split heads (head-major), fold softmax scale,
# cast matmul weights to bf16.
# ---------------------------------------------------------------------------
def _prep_params(layers, n_head):
    keys = ("wq", "bq", "wk", "bk", "wv", "bv", "wo", "bo",
            "w1", "b1", "w2", "b2", "g1", "be1", "g2", "be2")
    stk = {k: [] for k in keys}

    for (wqkv_t, bqkv, wo_t, bo, w1_t, b1, w2_t, b2, g1, be1, g2, be2) in layers:
        D = wqkv_t.shape[0]
        hd = D // n_head
        inv = 1.0 / (hd ** 0.5)

        def head_w(w):      # (D, D) -> (H, D, hd): head h = columns h*hd:(h+1)*hd
            return w.reshape(D, n_head, hd).transpose(1, 0, 2)

        def head_b(b):      # (1, D) -> (H, 1, hd)
            return b.reshape(n_head, hd)[:, None, :]

        stk["wq"].append(head_w(wqkv_t[:, :D] * inv))          # softmax scale folded
        stk["wk"].append(head_w(wqkv_t[:, D:2 * D]))
        stk["wv"].append(head_w(wqkv_t[:, 2 * D:]))
        stk["bq"].append(head_b(bqkv[:, :D] * inv))
        stk["bk"].append(head_b(bqkv[:, D:2 * D]))
        stk["bv"].append(head_b(bqkv[:, 2 * D:]))
        stk["wo"].append(wo_t.reshape(n_head, hd, D))           # rows h*hd:(h+1)*hd of Wo^T
        stk["bo"].append(bo)
        stk["w1"].append(w1_t); stk["b1"].append(b1)
        stk["w2"].append(w2_t); stk["b2"].append(b2)
        stk["g1"].append(g1); stk["be1"].append(be1)
        stk["g2"].append(g2); stk["be2"].append(be2)

    out = {k: jnp.stack(v) for k, v in stk.items()}
    for k in ("wq", "wk", "wv", "wo", "w1", "w2"):
        out[k] = out[k].astype(jnp.bfloat16)   # MXU operands; biases/LN stay f32
    return out


# ---------------------------------------------------------------------------
# Wrapper: embeddings + per-batch key bias in plain JAX, one pallas_call.
# ---------------------------------------------------------------------------
def encoder_forward(src, mask, emb_token, emb_position, layers, n_head):
    B, S = src.shape
    D = emb_token.shape[1]
    n_layer = len(layers)
    scale = D ** 0.5

    tok = jnp.take(emb_token, src, axis=0)                  # (B, S, D)
    pos = emb_position[:S][None, :, :]                      # (1, S, D)
    x = (tok * scale + pos).astype(jnp.float32)             # dropout = identity

    # Per-batch additive key-padding bias: O(B*S), not O((B*S)^2).
    key_bias = jnp.where(mask, NEG_INF, 0.0).astype(jnp.float32)[:, None, :]  # (B,1,S)
    # NOTE: a fully padded sequence would yield a uniform softmax, whereas
    # PyTorch MultiheadAttention returns NaN; not reachable with this mask.

    p = _prep_params(layers, n_head)

    args = (x, key_bias,
            p["wq"], p["bq"], p["wk"], p["bk"], p["wv"], p["bv"],
            p["wo"], p["bo"], p["w1"], p["b1"], p["w2"], p["b2"],
            p["g1"], p["be1"], p["g2"], p["be2"])

    def batch_spec(shape):          # indexed by batch, constant over layers
        rest = tuple(shape[1:])
        return pl.BlockSpec((1,) + rest,
                            lambda b, l, _n=len(rest): (b,) + (0,) * _n)

    def layer_spec(shape):          # indexed by layer, constant over batches
        rest = tuple(shape[1:])
        return pl.BlockSpec((1,) + rest,
                            lambda b, l, _n=len(rest): (l,) + (0,) * _n)

    in_specs = [batch_spec(x.shape), batch_spec(key_bias.shape)]
    in_specs += [layer_spec(a.shape) for a in args[2:]]

    out = pl.pallas_call(
        _encoder_layer_kernel,
        out_shape=jax.ShapeDtypeStruct((B, S, D), jnp.float32),
        grid=(B, n_layer),
        in_specs=in_specs,
        out_specs=pl.BlockSpec((1, S, D), lambda b, l: (b, 0, 0)),
        compiler_params=pltpu.CompilerParams(
            dimension_semantics=("parallel", "arbitrary")),
    )(*args)
    return out


# ---------------------------------------------------------------------------
# Pure-JAX f32 reference (same math) used for the correctness check.
# ---------------------------------------------------------------------------
def _ref_layer(x, bias, params, n_head):
    (wqkv_t, bqkv, wo_t, bo, w1_t, b1, w2_t, b2, g1, be1, g2, be2) = params
    B, S, D = x.shape
    hd = D // n_head
    qkv = x @ wqkv_t + bqkv
    q, k, v = qkv[..., :D], qkv[..., D:2 * D], qkv[..., 2 * D:]

    def split(t):  # (B,S,D) -> (B,H,S,hd)
        return t.reshape(B, S, n_head, hd).transpose(0, 2, 1, 3)

    qh, kh, vh = split(q), split(k), split(v)
    s = jnp.einsum("bhqd,bhkd->bhqk", qh, kh) / (hd ** 0.5)
    s = s + bias[:, None, :, :]
    p = jax.nn.softmax(s, axis=-1)
    a = jnp.einsum("bhqk,bhkd->bhqd", p, vh).transpose(0, 2, 1, 3).reshape(B, S, D)
    a = a @ wo_t + bo
    x1 = _layer_norm(x + a, g1, be1)
    ff = jnp.maximum(x1 @ w1_t + b1, 0.0) @ w2_t + b2
    return _layer_norm(x1 + ff, g2, be2)


def ref_encoder(src, mask, emb_token, emb_position, layers, n_head):
    B, S = src.shape
    D = emb_token.shape[1]
    x = jnp.take(emb_token, src, axis=0) * (D ** 0.5) + emb_position[:S][None]
    bias = jnp.where(mask, NEG_INF, 0.0).astype(jnp.float32)[:, None, :]
    for p in layers:
        x = _ref_layer(x, bias, p, n_head)
    return x


# ---------------------------------------------------------------------------
def init_layers(key, D, FF, n_layer):
    layers = []
    for i in range(n_layer):
        ks = jax.random.split(jax.random.fold_in(key, i), 8)
        wqkv_t = (jax.random.normal(ks[0], (3 * D, D), jnp.float32) * 0.05).T  # (D, 3D)
        bqkv = jax.random.normal(ks[1], (1, 3 * D), jnp.float32) * 0.02
        wo_t = (jax.random.normal(ks[2], (D, D), jnp.float32) * 0.05).T        # (D, D)
        bo = jax.random.normal(ks[3], (1, D), jnp.float32) * 0.02
        w1_t = (jax.random.normal(ks[4], (FF, D), jnp.float32) * 0.05).T       # (D, FF)
        b1 = jax.random.normal(ks[5], (1, FF), jnp.float32) * 0.02
        w2_t = (jax.random.normal(ks[6], (D, FF), jnp.float32) * 0.05).T       # (FF, D)
        b2 = jax.random.normal(ks[7], (1, D), jnp.float32) * 0.02
        g1 = jnp.ones((1, D), jnp.float32)
        be1 = jnp.zeros((1, D), jnp.float32)
        g2 = jnp.ones((1, D), jnp.float32)
        be2 = jnp.zeros((1, D), jnp.float32)
        layers.append((wqkv_t, bqkv, wo_t, bo, w1_t, b1, w2_t, b2, g1, be1, g2, be2))
    return layers


if __name__ == "__main__":
    # module config: Encoder(size_in, size_hid, n_layer, n_head, size_ff, dropout)
    size_in, size_hid, n_layer, n_head, size_ff = 50, 32, 2, 4, 64
    max_len = 128
    B, S = 2, 8

    key = jax.random.PRNGKey(0)
    k_tok, k_pos, k_par, k_src = jax.random.split(key, 4)

    emb_token = jax.random.normal(k_tok, (size_in, size_hid), jnp.float32) * 0.1
    emb_position = jax.random.normal(k_pos, (max_len, size_hid), jnp.float32) * 0.1
    layers = init_layers(k_par, size_hid, size_ff, n_layer)

    src = jax.random.randint(k_src, (B, S), 0, size_in)            # token ids
    mask = jnp.zeros((B, S), dtype=bool).at[:, S - 2:].set(True)   # last 2 tokens = PAD

    out = encoder_forward(src, mask, emb_token, emb_position, layers, n_head)
    out = jax.block_until_ready(out)

    ref = ref_encoder(src, mask, emb_token, emb_position, layers, n_head)
    # bf16 matmul operands vs. an f32 reference -> modest tolerance.
    np.testing.assert_allclose(np.asarray(out), np.asarray(ref), rtol=2e-2, atol=2e-2)

    print("KERNEL_OK")
</pallas_src>

<mosaic_0001>
module attributes {stable_mosaic.version = 11 : i64} {
  func.func @_encoder_layer_kernel(%arg0: i32, %arg1: i32, %arg2: memref<1x8x32xf32, #tpu.memory_space<vmem>>, %arg3: memref<1x1x8xf32, #tpu.memory_space<vmem>>, %arg4: memref<1x4x32x8xbf16, #tpu.memory_space<vmem>>, %arg5: memref<1x4x1x8xf32, #tpu.memory_space<vmem>>, %arg6: memref<1x4x32x8xbf16, #tpu.memory_space<vmem>>, %arg7: memref<1x4x1x8xf32, #tpu.memory_space<vmem>>, %arg8: memref<1x4x32x8xbf16, #tpu.memory_space<vmem>>, %arg9: memref<1x4x1x8xf32, #tpu.memory_space<vmem>>, %arg10: memref<1x4x8x32xbf16, #tpu.memory_space<vmem>>, %arg11: memref<1x1x32xf32, #tpu.memory_space<vmem>>, %arg12: memref<1x32x64xbf16, #tpu.memory_space<vmem>>, %arg13: memref<1x1x64xf32, #tpu.memory_space<vmem>>, %arg14: memref<1x64x32xbf16, #tpu.memory_space<vmem>>, %arg15: memref<1x1x32xf32, #tpu.memory_space<vmem>>, %arg16: memref<1x1x32xf32, #tpu.memory_space<vmem>>, %arg17: memref<1x1x32xf32, #tpu.memory_space<vmem>>, %arg18: memref<1x1x32xf32, #tpu.memory_space<vmem>>, %arg19: memref<1x1x32xf32, #tpu.memory_space<vmem>>, %arg20: memref<1x8x32xf32, #tpu.memory_space<vmem>>) attributes {dimension_semantics = [#tpu.dimension_semantics<parallel>, #tpu.dimension_semantics<arbitrary>], iteration_bounds = array<i64: 2, 2>, scalar_prefetch = 0 : i64, scratch_operands = 0 : i64, tpu.core_type = #tpu.core_type<tc>, window_params = [{transform_indices = @transform_0, window_bounds = array<i64: 1, 8, 32>}, {transform_indices = @transform_1, window_bounds = array<i64: 1, 1, 8>}, {transform_indices = @transform_2, window_bounds = array<i64: 1, 4, 32, 8>}, {transform_indices = @transform_3, window_bounds = array<i64: 1, 4, 1, 8>}, {transform_indices = @transform_4, window_bounds = array<i64: 1, 4, 32, 8>}, {transform_indices = @transform_5, window_bounds = array<i64: 1, 4, 1, 8>}, {transform_indices = @transform_6, window_bounds = array<i64: 1, 4, 32, 8>}, {transform_indices = @transform_7, window_bounds = array<i64: 1, 4, 1, 8>}, {transform_indices = @transform_8, window_bounds = array<i64: 1, 4, 8, 32>}, {transform_indices = @transform_9, window_bounds = array<i64: 1, 1, 32>}, {transform_indices = @transform_10, window_bounds = array<i64: 1, 32, 64>}, {transform_indices = @transform_11, window_bounds = array<i64: 1, 1, 64>}, {transform_indices = @transform_12, window_bounds = array<i64: 1, 64, 32>}, {transform_indices = @transform_13, window_bounds = array<i64: 1, 1, 32>}, {transform_indices = @transform_14, window_bounds = array<i64: 1, 1, 32>}, {transform_indices = @transform_15, window_bounds = array<i64: 1, 1, 32>}, {transform_indices = @transform_16, window_bounds = array<i64: 1, 1, 32>}, {transform_indices = @transform_17, window_bounds = array<i64: 1, 1, 32>}, {transform_indices = @transform_18, window_bounds = array<i64: 1, 8, 32>}]} {
    %c0_i32 = arith.constant 0 : i32
    %0 = arith.cmpi eq, %arg1, %c0_i32 : i32
    %1 = arith.extui %0 : i1 to i32
    %c0_i32_0 = arith.constant 0 : i32
    %2 = arith.cmpi ne, %1, %c0_i32_0 : i32
    scf.if %2 {
      %c0_85 = arith.constant 0 : index
      %c0_86 = arith.constant 0 : index
      %c0_87 = arith.constant 0 : index
      %133 = vector.load %arg2[%c0_85, %c0_86, %c0_87] : memref<1x8x32xf32, #tpu.memory_space<vmem>>, vector<1x8x32xf32>
      %c0_88 = arith.constant 0 : index
      %c0_89 = arith.constant 0 : index
      %c0_90 = arith.constant 0 : index
      %134 = vector.load %arg20[%c0_88, %c0_89, %c0_90] : memref<1x8x32xf32, #tpu.memory_space<vmem>>, vector<1x8x32xf32>
      tpu.vector_store %arg20[%c0_88, %c0_89, %c0_90], %133 {strides = array<i32>} : memref<1x8x32xf32, #tpu.memory_space<vmem>>, vector<1x8x32xf32>,
    } else {
    }
    %c0 = arith.constant 0 : index
    %c0_1 = arith.constant 0 : index
    %c0_2 = arith.constant 0 : index
    %3 = vector.load %arg20[%c0, %c0_1, %c0_2] : memref<1x8x32xf32, #tpu.memory_space<vmem>>, vector<1x8x32xf32>
    %4 = vector.shape_cast %3 : vector<1x8x32xf32> to vector<8x32xf32>
    %5 = arith.truncf %4 : vector<8x32xf32> to vector<8x32xbf16>
    %6 = vector.shape_cast %5 : vector<8x32xbf16> to vector<1x8x32xbf16>
    %7 = vector.shape_cast %6 : vector<1x8x32xbf16> to vector<1x8x32xbf16>
    %8 = vector.broadcast %7 : vector<1x8x32xbf16> to vector<4x8x32xbf16>
    %c0_3 = arith.constant 0 : index
    %c0_4 = arith.constant 0 : index
    %c0_5 = arith.constant 0 : index
    %c0_6 = arith.constant 0 : index
    %9 = vector.load %arg4[%c0_3, %c0_4, %c0_5, %c0_6] : memref<1x4x32x8xbf16, #tpu.memory_space<vmem>>, vector<1x4x32x8xbf16>
    %10 = vector.shape_cast %9 : vector<1x4x32x8xbf16> to vector<4x32x8xbf16>
    %cst = arith.constant dense<0.000000e+00> : vector<4x8x8xf32>
    %11 = tpu.matmul %8, %10, %cst {dimension_numbers = #tpu.dot_dimension_numbers<[2], [1], [1], [2], [0, 0, 0, 1, 1, 2], [0], [0]>} : vector<4x8x32xbf16>, vector<4x32x8xbf16>, vector<4x8x8xf32> -> vector<4x8x8xf32>
    %c0_7 = arith.constant 0 : index
    %c0_8 = arith.constant 0 : index
    %c0_9 = arith.constant 0 : index
    %c0_10 = arith.constant 0 : index
    %12 = vector.load %arg5[%c0_7, %c0_8, %c0_9, %c0_10] : memref<1x4x1x8xf32, #tpu.memory_space<vmem>>, vector<1x4x1x8xf32>
    %13 = vector.shape_cast %12 : vector<1x4x1x8xf32> to vector<4x1x8xf32>
    %14 = vector.broadcast %13 : vector<4x1x8xf32> to vector<4x8x8xf32>
    %15 = arith.addf %11, %14 : vector<4x8x8xf32>
    %c0_11 = arith.constant 0 : index
    %c0_12 = arith.constant 0 : index
    %c0_13 = arith.constant 0 : index
    %c0_14 = arith.constant 0 : index
    %16 = vector.load %arg6[%c0_11, %c0_12, %c0_13, %c0_14] : memref<1x4x32x8xbf16, #tpu.memory_space<vmem>>, vector<1x4x32x8xbf16>
    %17 = vector.shape_cast %16 : vector<1x4x32x8xbf16> to vector<4x32x8xbf16>
    %cst_15 = arith.constant dense<0.000000e+00> : vector<4x8x8xf32>
    %18 = tpu.matmul %8, %17, %cst_15 {dimension_numbers = #tpu.dot_dimension_numbers<[2], [1], [1], [2], [0, 0, 0, 1, 1, 2], [0], [0]>} : vector<4x8x32xbf16>, vector<4x32x8xbf16>, vector<4x8x8xf32> -> vector<4x8x8xf32>
    %c0_16 = arith.constant 0 : index
    %c0_17 = arith.constant 0 : index
    %c0_18 = arith.constant 0 : index
    %c0_19 = arith.constant 0 : index
    %19 = vector.load %arg7[%c0_16, %c0_17, %c0_18, %c0_19] : memref<1x4x1x8xf32, #tpu.memory_space<vmem>>, vector<1x4x1x8xf32>
    %20 = vector.shape_cast %19 : vector<1x4x1x8xf32> to vector<4x1x8xf32>
    %21 = vector.broadcast %20 : vector<4x1x8xf32> to vector<4x8x8xf32>
    %22 = arith.addf %18, %21 : vector<4x8x8xf32>
    %c0_20 = arith.constant 0 : index
    %c0_21 = arith.constant 0 : index
    %c0_22 = arith.constant 0 : index
    %c0_23 = arith.constant 0 : index
    %23 = vector.load %arg8[%c0_20, %c0_21, %c0_22, %c0_23] : memref<1x4x32x8xbf16, #tpu.memory_space<vmem>>, vector<1x4x32x8xbf16>
    %24 = vector.shape_cast %23 : vector<1x4x32x8xbf16> to vector<4x32x8xbf16>
    %cst_24 = arith.constant dense<0.000000e+00> : vector<4x8x8xf32>
    %25 = tpu.matmul %8, %24, %cst_24 {dimension_numbers = #tpu.dot_dimension_numbers<[2], [1], [1], [2], [0, 0, 0, 1, 1, 2], [0], [0]>} : vector<4x8x32xbf16>, vector<4x32x8xbf16>, vector<4x8x8xf32> -> vector<4x8x8xf32>
    %c0_25 = arith.constant 0 : index
    %c0_26 = arith.constant 0 : index
    %c0_27 = arith.constant 0 : index
    %c0_28 = arith.constant 0 : index
    %26 = vector.load %arg9[%c0_25, %c0_26, %c0_27, %c0_28] : memref<1x4x1x8xf32, #tpu.memory_space<vmem>>, vector<1x4x1x8xf32>
    %27 = vector.shape_cast %26 : vector<1x4x1x8xf32> to vector<4x1x8xf32>
    %28 = vector.broadcast %27 : vector<4x1x8xf32> to vector<4x8x8xf32>
    %29 = arith.addf %25, %28 : vector<4x8x8xf32>
    %30 = arith.truncf %15 : vector<4x8x8xf32> to vector<4x8x8xbf16>
    %31 = arith.truncf %22 : vector<4x8x8xf32> to vector<4x8x8xbf16>
    %cst_29 = arith.constant dense<0.000000e+00> : vector<4x8x8xf32>
    %32 = tpu.matmul %30, %31, %cst_29 {dimension_numbers = #tpu.dot_dimension_numbers<[2], [2], [1], [1], [0, 0, 0, 1, 1, 1], [0], [0]>} : vector<4x8x8xbf16>, vector<4x8x8xbf16>, vector<4x8x8xf32> -> vector<4x8x8xf32>
    %c0_30 = arith.constant 0 : index
    %c0_31 = arith.constant 0 : index
    %c0_32 = arith.constant 0 : index
    %33 = vector.load %arg3[%c0_30, %c0_31, %c0_32] : memref<1x1x8xf32, #tpu.memory_space<vmem>>, vector<1x1x8xf32>
    %34 = vector.broadcast %33 : vector<1x1x8xf32> to vector<4x8x8xf32>
    %35 = arith.addf %32, %34 : vector<4x8x8xf32>
    %cst_33 = arith.constant dense<0xFF800000> : vector<4x8xf32>
    %36 = vector.multi_reduction <maximumf>, %35, %cst_33 [2] : vector<4x8x8xf32> to vector<4x8xf32>
    %37 = vector.shape_cast %36 : vector<4x8xf32> to vector<4x8x1xf32>
    %38 = vector.broadcast %37 : vector<4x8x1xf32> to vector<4x8x8xf32>
    %39 = arith.subf %35, %38 : vector<4x8x8xf32>
    %40 = math.exp %39 : vector<4x8x8xf32>
    %cst_34 = arith.constant dense<0.000000e+00> : vector<4x8xf32>
    %41 = vector.multi_reduction <add>, %40, %cst_34 [2] : vector<4x8x8xf32> to vector<4x8xf32>
    %42 = vector.shape_cast %41 : vector<4x8xf32> to vector<4x8x1xf32>
    %43 = tpu.reciprocal %42 {approx = true} : vector<4x8x1xf32> -> vector<4x8x1xf32>
    %44 = vector.broadcast %43 : vector<4x8x1xf32> to vector<4x8x8xf32>
    %45 = arith.mulf %40, %44 : vector<4x8x8xf32>
    %46 = arith.truncf %45 : vector<4x8x8xf32> to vector<4x8x8xbf16>
    %47 = arith.truncf %29 : vector<4x8x8xf32> to vector<4x8x8xbf16>
    %cst_35 = arith.constant dense<0.000000e+00> : vector<4x8x8xf32>
    %48 = tpu.matmul %46, %47, %cst_35 {dimension_numbers = #tpu.dot_dimension_numbers<[2], [1], [1], [2], [0, 0, 0, 1, 1, 2], [0], [0]>} : vector<4x8x8xbf16>, vector<4x8x8xbf16>, vector<4x8x8xf32> -> vector<4x8x8xf32>
    %49 = arith.truncf %48 : vector<4x8x8xf32> to vector<4x8x8xbf16>
    %c0_36 = arith.constant 0 : index
    %c0_37 = arith.constant 0 : index
    %c0_38 = arith.constant 0 : index
    %c0_39 = arith.constant 0 : index
    %50 = vector.load %arg10[%c0_36, %c0_37, %c0_38, %c0_39] : memref<1x4x8x32xbf16, #tpu.memory_space<vmem>>, vector<1x4x8x32xbf16>
    %51 = vector.shape_cast %50 : vector<1x4x8x32xbf16> to vector<4x8x32xbf16>
    %cst_40 = arith.constant dense<0.000000e+00> : vector<4x8x32xf32>
    %52 = tpu.matmul %49, %51, %cst_40 {dimension_numbers = #tpu.dot_dimension_numbers<[2], [1], [1], [2], [0, 0, 0, 1, 1, 2], [0], [0]>} : vector<4x8x8xbf16>, vector<4x8x32xbf16>, vector<4x8x32xf32> -> vector<4x8x32xf32>
    %cst_41 = arith.constant dense<0.000000e+00> : vector<8x32xf32>
    %53 = vector.multi_reduction <add>, %52, %cst_41 [0] : vector<4x8x32xf32> to vector<8x32xf32>
    %c0_42 = arith.constant 0 : index
    %c0_43 = arith.constant 0 : index
    %c0_44 = arith.constant 0 : index
    %54 = vector.load %arg11[%c0_42, %c0_43, %c0_44] : memref<1x1x32xf32, #tpu.memory_space<vmem>>, vector<1x1x32xf32>
    %55 = vector.shape_cast %54 : vector<1x1x32xf32> to vector<1x32xf32>
    %56 = vector.broadcast %55 : vector<1x32xf32> to vector<8x32xf32>
    %57 = arith.addf %53, %56 : vector<8x32xf32>
    %58 = arith.addf %4, %57 : vector<8x32xf32>
    %c0_45 = arith.constant 0 : index
    %c0_46 = arith.constant 0 : index
    %c0_47 = arith.constant 0 : index
    %59 = vector.load %arg16[%c0_45, %c0_46, %c0_47] : memref<1x1x32xf32, #tpu.memory_space<vmem>>, vector<1x1x32xf32>
    %60 = vector.shape_cast %59 : vector<1x1x32xf32> to vector<1x32xf32>
    %c0_48 = arith.constant 0 : index
    %c0_49 = arith.constant 0 : index
    %c0_50 = arith.constant 0 : index
    %61 = vector.load %arg17[%c0_48, %c0_49, %c0_50] : memref<1x1x32xf32, #tpu.memory_space<vmem>>, vector<1x1x32xf32>
    %62 = vector.shape_cast %61 : vector<1x1x32xf32> to vector<1x32xf32>
    %cst_51 = arith.constant dense<0.000000e+00> : vector<8xf32>
    %63 = vector.multi_reduction <add>, %58, %cst_51 [1] : vector<8x32xf32> to vector<8xf32>
    %64 = vector.shape_cast %63 : vector<8xf32> to vector<8x1xf32>
    %cst_52 = arith.constant 3.200000e+01 : f32
    %65 = vector.broadcast %cst_52 : f32 to vector<8x1xf32>
    %66 = arith.divf %64, %65 : vector<8x1xf32>
    %67 = vector.broadcast %66 : vector<8x1xf32> to vector<8x32xf32>
    %68 = arith.subf %58, %67 : vector<8x32xf32>
    %69 = arith.mulf %68, %68 : vector<8x32xf32>
    %cst_53 = arith.constant dense<0.000000e+00> : vector<8xf32>
    %70 = vector.multi_reduction <add>, %69, %cst_53 [1] : vector<8x32xf32> to vector<8xf32>
    %71 = vector.shape_cast %70 : vector<8xf32> to vector<8x1xf32>
    %cst_54 = arith.constant 3.200000e+01 : f32
    %72 = vector.broadcast %cst_54 : f32 to vector<8x1xf32>
    %73 = arith.divf %71, %72 : vector<8x1xf32>
    %74 = vector.broadcast %66 : vector<8x1xf32> to vector<8x32xf32>
    %75 = arith.subf %58, %74 : vector<8x32xf32>
    %cst_55 = arith.constant 9.99999974E-6 : f32
    %76 = vector.broadcast %cst_55 : f32 to vector<8x1xf32>
    %77 = arith.addf %73, %76 : vector<8x1xf32>
    %78 = math.rsqrt %77 : vector<8x1xf32>
    %79 = vector.broadcast %78 : vector<8x1xf32> to vector<8x32xf32>
    %80 = arith.mulf %75, %79 : vector<8x32xf32>
    %81 = vector.broadcast %60 : vector<1x32xf32> to vector<8x32xf32>
    %82 = arith.mulf %80, %81 : vector<8x32xf32>
    %83 = vector.broadcast %62 : vector<1x32xf32> to vector<8x32xf32>
    %84 = arith.addf %82, %83 : vector<8x32xf32>
    %85 = arith.truncf %84 : vector<8x32xf32> to vector<8x32xbf16>
    %c0_56 = arith.constant 0 : index
    %c0_57 = arith.constant 0 : index
    %c0_58 = arith.constant 0 : index
    %86 = vector.load %arg12[%c0_56, %c0_57, %c0_58] : memref<1x32x64xbf16, #tpu.memory_space<vmem>>, vector<1x32x64xbf16>
    %87 = vector.shape_cast %86 : vector<1x32x64xbf16> to vector<32x64xbf16>
    %cst_59 = arith.constant dense<0.000000e+00> : vector<8x64xf32>
    %88 = tpu.matmul %85, %87, %cst_59 {dimension_numbers = #tpu.dot_dimension_numbers<[1], [0], [0], [1], [0, 0, 1, 1], [], []>} : vector<8x32xbf16>, vector<32x64xbf16>, vector<8x64xf32> -> vector<8x64xf32>
    %c0_60 = arith.constant 0 : index
    %c0_61 = arith.constant 0 : index
    %c0_62 = arith.constant 0 : index
    %89 = vector.load %arg13[%c0_60, %c0_61, %c0_62] : memref<1x1x64xf32, #tpu.memory_space<vmem>>, vector<1x1x64xf32>
    %90 = vector.shape_cast %89 : vector<1x1x64xf32> to vector<1x64xf32>
    %91 = vector.broadcast %90 : vector<1x64xf32> to vector<8x64xf32>
    %92 = arith.addf %88, %91 : vector<8x64xf32>
    %cst_63 = arith.constant 0.000000e+00 : f32
    %93 = vector.broadcast %cst_63 : f32 to vector<8x64xf32>
    %94 = arith.maximumf %92, %93 : vector<8x64xf32>
    %95 = arith.truncf %94 : vector<8x64xf32> to vector<8x64xbf16>
    %c0_64 = arith.constant 0 : index
    %c0_65 = arith.constant 0 : index
    %c0_66 = arith.constant 0 : index
    %96 = vector.load %arg14[%c0_64, %c0_65, %c0_66] : memref<1x64x32xbf16, #tpu.memory_space<vmem>>, vector<1x64x32xbf16>
    %97 = vector.shape_cast %96 : vector<1x64x32xbf16> to vector<64x32xbf16>
    %cst_67 = arith.constant dense<0.000000e+00> : vector<8x32xf32>
    %98 = tpu.matmul %95, %97, %cst_67 {dimension_numbers = #tpu.dot_dimension_numbers<[1], [0], [0], [1], [0, 0, 1, 1], [], []>} : vector<8x64xbf16>, vector<64x32xbf16>, vector<8x32xf32> -> vector<8x32xf32>
    %c0_68 = arith.constant 0 : index
    %c0_69 = arith.constant 0 : index
    %c0_70 = arith.constant 0 : index
    %99 = vector.load %arg15[%c0_68, %c0_69, %c0_70] : memref<1x1x32xf32, #tpu.memory_space<vmem>>, vector<1x1x32xf32>
    %100 = vector.shape_cast %99 : vector<1x1x32xf32> to vector<1x32xf32>
    %101 = vector.broadcast %100 : vector<1x32xf32> to vector<8x32xf32>
    %102 = arith.addf %98, %101 : vector<8x32xf32>
    %103 = arith.addf %84, %102 : vector<8x32xf32>
    %c0_71 = arith.constant 0 : index
    %c0_72 = arith.constant 0 : index
    %c0_73 = arith.constant 0 : index
    %104 = vector.load %arg18[%c0_71, %c0_72, %c0_73] : memref<1x1x32xf32, #tpu.memory_space<vmem>>, vector<1x1x32xf32>
    %105 = vector.shape_cast %104 : vector<1x1x32xf32> to vector<1x32xf32>
    %c0_74 = arith.constant 0 : index
    %c0_75 = arith.constant 0 : index
    %c0_76 = arith.constant 0 : index
    %106 = vector.load %arg19[%c0_74, %c0_75, %c0_76] : memref<1x1x32xf32, #tpu.memory_space<vmem>>, vector<1x1x32xf32>
    %107 = vector.shape_cast %106 : vector<1x1x32xf32> to vector<1x32xf32>
    %cst_77 = arith.constant dense<0.000000e+00> : vector<8xf32>
    %108 = vector.multi_reduction <add>, %103, %cst_77 [1] : vector<8x32xf32> to vector<8xf32>
    %109 = vector.shape_cast %108 : vector<8xf32> to vector<8x1xf32>
    %cst_78 = arith.constant 3.200000e+01 : f32
    %110 = vector.broadcast %cst_78 : f32 to vector<8x1xf32>
    %111 = arith.divf %109, %110 : vector<8x1xf32>
    %112 = vector.broadcast %111 : vector<8x1xf32> to vector<8x32xf32>
    %113 = arith.subf %103, %112 : vector<8x32xf32>
    %114 = arith.mulf %113, %113 : vector<8x32xf32>
    %cst_79 = arith.constant dense<0.000000e+00> : vector<8xf32>
    %115 = vector.multi_reduction <add>, %114, %cst_79 [1] : vector<8x32xf32> to vector<8xf32>
    %116 = vector.shape_cast %115 : vector<8xf32> to vector<8x1xf32>
    %cst_80 = arith.constant 3.200000e+01 : f32
    %117 = vector.broadcast %cst_80 : f32 to vector<8x1xf32>
    %118 = arith.divf %116, %117 : vector<8x1xf32>
    %119 = vector.broadcast %111 : vector<8x1xf32> to vector<8x32xf32>
    %120 = arith.subf %103, %119 : vector<8x32xf32>
    %cst_81 = arith.constant 9.99999974E-6 : f32
    %121 = vector.broadcast %cst_81 : f32 to vector<8x1xf32>
    %122 = arith.addf %118, %121 : vector<8x1xf32>
    %123 = math.rsqrt %122 : vector<8x1xf32>
    %124 = vector.broadcast %123 : vector<8x1xf32> to vector<8x32xf32>
    %125 = arith.mulf %120, %124 : vector<8x32xf32>
    %126 = vector.broadcast %105 : vector<1x32xf32> to vector<8x32xf32>
    %127 = arith.mulf %125, %126 : vector<8x32xf32>
    %128 = vector.broadcast %107 : vector<1x32xf32> to vector<8x32xf32>
    %129 = arith.addf %127, %128 : vector<8x32xf32>
    %c0_82 = arith.constant 0 : index
    %c0_83 = arith.constant 0 : index
    %c0_84 = arith.constant 0 : index
    %130 = vector.load %arg20[%c0_82, %c0_83, %c0_84] : memref<1x8x32xf32, #tpu.memory_space<vmem>>, vector<1x8x32xf32>
    %131 = vector.shape_cast %130 : vector<1x8x32xf32> to vector<8x32xf32>
    %132 = vector.shape_cast %129 : vector<8x32xf32> to vector<1x8x32xf32>
    tpu.vector_store %arg20[%c0_82, %c0_83, %c0_84], %132 {strides = array<i32>} : memref<1x8x32xf32, #tpu.memory_space<vmem>>, vector<1x8x32xf32>,
    return
  }
  func.func @transform_0(%arg0: i32, %arg1: i32) -> (i32, i32, i32) {
    %c0_i32 = arith.constant 0 : i32
    %c0_i32_0 = arith.constant 0 : i32
    %c0_i32_1 = arith.constant 0 : i32
    return %arg0, %c0_i32, %c0_i32_0 : i32, i32, i32
  }
  func.func @transform_1(%arg0: i32, %arg1: i32) -> (i32, i32, i32) {
    %c0_i32 = arith.constant 0 : i32
    %c0_i32_0 = arith.constant 0 : i32
    %c0_i32_1 = arith.constant 0 : i32
    return %arg0, %c0_i32, %c0_i32_0 : i32, i32, i32
  }
  func.func @transform_2(%arg0: i32, %arg1: i32) -> (i32, i32, i32, i32) {
    %c0_i32 = arith.constant 0 : i32
    %c0_i32_0 = arith.constant 0 : i32
    %c0_i32_1 = arith.constant 0 : i32
    %c0_i32_2 = arith.constant 0 : i32
    return %arg1, %c0_i32, %c0_i32_0, %c0_i32_1 : i32, i32, i32, i32
  }
  func.func @transform_3(%arg0: i32, %arg1: i32) -> (i32, i32, i32, i32) {
    %c0_i32 = arith.constant 0 : i32
    %c0_i32_0 = arith.constant 0 : i32
    %c0_i32_1 = arith.constant 0 : i32
    %c0_i32_2 = arith.constant 0 : i32
    return %arg1, %c0_i32, %c0_i32_0, %c0_i32_1 : i32, i32, i32, i32
  }
  func.func @transform_4(%arg0: i32, %arg1: i32) -> (i32, i32, i32, i32) {
    %c0_i32 = arith.constant 0 : i32
    %c0_i32_0 = arith.constant 0 : i32
    %c0_i32_1 = arith.constant 0 : i32
    %c0_i32_2 = arith.constant 0 : i32
    return %arg1, %c0_i32, %c0_i32_0, %c0_i32_1 : i32, i32, i32, i32
  }
  func.func @transform_5(%arg0: i32, %arg1: i32) -> (i32, i32, i32, i32) {
    %c0_i32 = arith.constant 0 : i32
    %c0_i32_0 = arith.constant 0 : i32
    %c0_i32_1 = arith.constant 0 : i32
    %c0_i32_2 = arith.constant 0 : i32
    return %arg1, %c0_i32, %c0_i32_0, %c0_i32_1 : i32, i32, i32, i32
  }
  func.func @transform_6(%arg0: i32, %arg1: i32) -> (i32, i32, i32, i32) {
    %c0_i32 = arith.constant 0 : i32
    %c0_i32_0 = arith.constant 0 : i32
    %c0_i32_1 = arith.constant 0 : i32
    %c0_i32_2 = arith.constant 0 : i32
    return %arg1, %c0_i32, %c0_i32_0, %c0_i32_1 : i32, i32, i32, i32
  }
  func.func @transform_7(%arg0: i32, %arg1: i32) -> (i32, i32, i32, i32) {
    %c0_i32 = arith.constant 0 : i32
    %c0_i32_0 = arith.constant 0 : i32
    %c0_i32_1 = arith.constant 0 : i32
    %c0_i32_2 = arith.constant 0 : i32
    return %arg1, %c0_i32, %c0_i32_0, %c0_i32_1 : i32, i32, i32, i32
  }
  func.func @transform_8(%arg0: i32, %arg1: i32) -> (i32, i32, i32, i32) {
    %c0_i32 = arith.constant 0 : i32
    %c0_i32_0 = arith.constant 0 : i32
    %c0_i32_1 = arith.constant 0 : i32
    %c0_i32_2 = arith.constant 0 : i32
    return %arg1, %c0_i32, %c0_i32_0, %c0_i32_1 : i32, i32, i32, i32
  }
  func.func @transform_9(%arg0: i32, %arg1: i32) -> (i32, i32, i32) {
    %c0_i32 = arith.constant 0 : i32
    %c0_i32_0 = arith.constant 0 : i32
    %c0_i32_1 = arith.constant 0 : i32
    return %arg1, %c0_i32, %c0_i32_0 : i32, i32, i32
  }
  func.func @transform_10(%arg0: i32, %arg1: i32) -> (i32, i32, i32) {
    %c0_i32 = arith.constant 0 : i32
    %c0_i32_0 = arith.constant 0 : i32
    %c0_i32_1 = arith.constant 0 : i32
    return %arg1, %c0_i32, %c0_i32_0 : i32, i32, i32
  }
  func.func @transform_11(%arg0: i32, %arg1: i32) -> (i32, i32, i32) {
    %c0_i32 = arith.constant 0 : i32
    %c0_i32_0 = arith.constant 0 : i32
    %c0_i32_1 = arith.constant 0 : i32
    return %arg1, %c0_i32, %c0_i32_0 : i32, i32, i32
  }
  func.func @transform_12(%arg0: i32, %arg1: i32) -> (i32, i32, i32) {
    %c0_i32 = arith.constant 0 : i32
    %c0_i32_0 = arith.constant 0 : i32
    %c0_i32_1 = arith.constant 0 : i32
    return %arg1, %c0_i32, %c0_i32_0 : i32, i32, i32
  }
  func.func @transform_13(%arg0: i32, %arg1: i32) -> (i32, i32, i32) {
    %c0_i32 = arith.constant 0 : i32
    %c0_i32_0 = arith.constant 0 : i32
    %c0_i32_1 = arith.constant 0 : i32
    return %arg1, %c0_i32, %c0_i32_0 : i32, i32, i32
  }
  func.func @transform_14(%arg0: i32, %arg1: i32) -> (i32, i32, i32) {
    %c0_i32 = arith.constant 0 : i32
    %c0_i32_0 = arith.constant 0 : i32
    %c0_i32_1 = arith.constant 0 : i32
    return %arg1, %c0_i32, %c0_i32_0 : i32, i32, i32
  }
  func.func @transform_15(%arg0: i32, %arg1: i32) -> (i32, i32, i32) {
    %c0_i32 = arith.constant 0 : i32
    %c0_i32_0 = arith.constant 0 : i32
    %c0_i32_1 = arith.constant 0 : i32
    return %arg1, %c0_i32, %c0_i32_0 : i32, i32, i32
  }
  func.func @transform_16(%arg0: i32, %arg1: i32) -> (i32, i32, i32) {
    %c0_i32 = arith.constant 0 : i32
    %c0_i32_0 = arith.constant 0 : i32
    %c0_i32_1 = arith.constant 0 : i32
    return %arg1, %c0_i32, %c0_i32_0 : i32, i32, i32
  }
  func.func @transform_17(%arg0: i32, %arg1: i32) -> (i32, i32, i32) {
    %c0_i32 = arith.constant 0 : i32
    %c0_i32_0 = arith.constant 0 : i32
    %c0_i32_1 = arith.constant 0 : i32
    return %arg1, %c0_i32, %c0_i32_0 : i32, i32, i32
  }
  func.func @transform_18(%arg0: i32, %arg1: i32) -> (i32, i32, i32) {
    %c0_i32 = arith.constant 0 : i32
    %c0_i32_0 = arith.constant 0 : i32
    %c0_i32_1 = arith.constant 0 : i32
    return %arg0, %c0_i32, %c0_i32_0 : i32, i32, i32
  }
}

</mosaic_0001>

<bundles_post_ra>
// kernel: tpu_custom_call.1
= control target key start
LH: loop header
LB: loop body
LE: loop exit
PB: predicated region body
PF: predicated region fallthrough
CT: control target
= control target key end

     0   :  { %s3915_s0 = inlined_call_operand.vmem [shape: f32[2,8,32], index: 0, kind: input, shape index: {}]   ;;  %s3916_s1 = inlined_call_operand.vmem [shape: f32[2,1,8], index: 1, kind: input, shape index: {}]   ;;  %s3917_s2 = inlined_call_operand.vmem [shape: bf16[2,4,32,8], index: 2, kind: input, shape index: {}]   ;;  %s3918_s3 = inlined_call_operand.vmem [shape: f32[2,4,1,8], index: 3, kind: input, shape index: {}]   ;;  %s3919_s4 = inlined_call_operand.vmem [shape: bf16[2,4,32,8], index: 4, kind: input, shape index: {}]   ;;  %s3920_s5 = inlined_call_operand.vmem [shape: f32[2,4,1,8], index: 5, kind: input, shape index: {}]   ;;  %s3921_s6 = inlined_call_operand.vmem [shape: bf16[2,4,32,8], index: 6, kind: input, shape index: {}]   ;;  %s3922_s7 = inlined_call_operand.vmem [shape: f32[2,4,1,8], index: 7, kind: input, shape index: {}]   ;;  %s3923_s8 = inlined_call_operand.vmem [shape: bf16[2,4,8,32], index: 8, kind: input, shape index: {}]   ;;  %s3924_s9 = inlined_call_operand.vmem [shape: f32[2,1,32], index: 9, kind: input, shape index: {}]   ;;  %s3925_s10 = inlined_call_operand.vmem [shape: bf16[2,32,64], index: 10, kind: input, shape index: {}]   ;;  %s3926_s11 = inlined_call_operand.vmem [shape: f32[2,1,64], index: 11, kind: input, shape index: {}]   ;;  %s3927_s12 = inlined_call_operand.vmem [shape: bf16[2,64,32], index: 12, kind: input, shape index: {}]   ;;  %s3928_s13 = inlined_call_operand.vmem [shape: f32[2,1,32], index: 13, kind: input, shape index: {}]   ;;  %s3929_s14 = inlined_call_operand.vmem [shape: f32[2,1,32], index: 14, kind: input, shape index: {}]   ;;  %s3930_s15 = inlined_call_operand.vmem [shape: f32[2,1,32], index: 15, kind: input, shape index: {}]   ;;  %s3931_s16 = inlined_call_operand.vmem [shape: f32[2,1,32], index: 16, kind: input, shape index: {}]   ;;  %s3932_s17 = inlined_call_operand.vmem [shape: f32[2,1,32], index: 17, kind: input, shape index: {}]   ;;  %s3933_s18 = inlined_call_operand.hbm [shape: f32[2,8,32], index: 18, kind: output, shape index: {}]  }
   0x1   :  { %3952 = sst [smem:[#allocation21_spill]] %s3915_s0 }
   0x2   :  { %3953 = sst [smem:[#allocation22_spill]] %s3916_s1 }
   0x3   :  { %3954 = sst [smem:[#allocation23_spill]] %s3917_s2 }
   0x4   :  { %3955 = sst [smem:[#allocation24_spill]] %s3918_s3 }
   0x5   :  { %3956 = sst [smem:[#allocation25_spill]] %s3919_s4 }
   0x6   :  { %3957 = sst [smem:[#allocation26_spill]] %s3920_s5 }
   0x7   :  { %3958 = sst [smem:[#allocation27_spill]] %s3921_s6 }
   0x8   :  { %3959 = sst [smem:[#allocation28_spill]] %s3922_s7 }
   0x9   :  { %3960 = sst [smem:[#allocation29_spill]] %s3923_s8 }
   0xa   :  { %3961 = sst [smem:[#allocation30_spill]] %s3924_s9 }
   0xb   :  { %3962 = sst [smem:[#allocation31_spill]] %s3925_s10 }
   0xc   :  { %3963 = sst [smem:[#allocation32_spill]] %s3926_s11 }
   0xd   :  { %3964 = sst [smem:[#allocation33_spill]] %s3928_s13 }
   0xe   :  { %3965 = sst [smem:[#allocation34_spill]] %s3929_s14 }
   0xf   :  { %3966 = sst [smem:[#allocation35_spill]] %s3930_s15 }
  0x10   :  { %3967 = sst [smem:[#allocation36_spill]] %s3931_s16 }
  0x11   :  { %3968 = sst [smem:[#allocation37_spill]] %s3932_s17 }
  0x12   :  { %3969 = sst [smem:[#allocation38_spill]] %s3933_s18 }
  0x13   :  { %23 = vsyncpa [#allocation3], 0 }
  0x14   :  { %25 = vsyncpa [#allocation3 + $0x1], 0  ;;  %s3438_s27 = smov 0   ;;  %s3440_s28 = smov 0  }
  0x15   :  { %s3442_s29 = smov 0   ;;  %s3444_s30 = smov 0  }
  0x16   :  { %s3446_s0 = smov 0   ;;  %s3448_s19 = smov 0  }
  0x17   :  { %s3450_s1 = smov 0   ;;  %s3452_s20 = smov 0  }
  0x18 LB: > { %3970 = sst [smem:[#allocation5_spill]] %s3310_s27  ;;  %s2758_s21 = sadd.s32 4294967295, %s3338_s20   ;;  %s3338_s20 = sphi %s3452_s20, %s31_s20   ;;  %s3334_s1 = sphi %s3450_s1, %s4035_s1   ;;  %s3330_s19 = sphi %s3448_s19, %s4034_s19   ;;  %s3326_s0 = sphi %s3446_s0, %s4033_s0   ;;  %s3322_s30 = sphi %s3444_s30, %s4032_s30   ;;  %s3318_s29 = sphi %s3442_s29, %s4031_s29   ;;  %s3314_s28 = sphi %s3440_s28, %s4030_s28   ;;  %s3310_s27 = sphi %s3438_s27, %s4029_s27  }
  0x19   : > { %3971 = sst [smem:[#allocation6_spill]] %s3314_s28  ;;  %s2759_s22 = sadd.s32 4294967294, %s3338_s20  }
  0x1a   : > { %3972 = sst [smem:[#allocation7_spill]] %s3318_s29  ;;  %s40_s2 = sadd.s32 1, %s3330_s19 }
  0x1b   : > { %3973 = sst [smem:[#allocation8_spill]] %s3322_s30  ;;  %p41_p0 = scmp.ge.s32.totalorder %s40_s2, 2 }
  0x1c   : > { %3974 = sst [smem:[#allocation9_spill]] %s3326_s0  ;;  %s43_s23 = sadd.s32 1, %s3334_s1 }
  0x1d   : > { %3975 = sst [smem:[#allocation10_spill]] %s3330_s19  ;;  %p528_p1 = scmp.ne.s32.totalorder %s3318_s29, %s3314_s28 }
  0x1e   : > { %3976 = sst [smem:[#allocation11_spill]] %s3334_s1  ;;  %p529_p2 = scmp.eq.s32.totalorder %s2758_s21, 3 }
  0x1f   : > { %3977 = sst [smem:[#allocation12_spill]] %s3338_s20  ;;  %s4037_s2 = smov (%p41_p0, %s40_s2), 0 }
  0x20   : > { %3978 = sst [smem:[#allocation13_spill]] %s4037_s2  ;;  %s4039_s23 = smov (!%p41_p0, %s43_s23), %s3334_s1 }
  0x21   : > { %p3487_p3 = por %p529_p2, %p528_p1  ;;  %p534_p4 = scmp.ne.s32.totalorder %s3314_s28, %s3310_s27 }
  0x22   : > { %p45_p5 = scmp.ge.s32.totalorder %s4039_s23, 2  ;;  %p535_p6 = scmp.eq.s32.totalorder %s2759_s22, 3 }
  0x23   : > { %s3979_s24 = scalar_select %p3487_p3, 1, 0 }
  0x24   : > { %p2762_p7 = scmp.ge.s32.totalorder %s3338_s20, 1  ;;  %p677_p8 = scmp.lt.s32.totalorder %s3338_s20, 5 }
  0x25   : > { %3980 = sst [smem:[#allocation14_spill]] %s3979_s24  ;;  %s4041_s23 = smov (%p45_p5, %s4039_s23), 0 }
  0x26   : > { %3981 = sst [smem:[#allocation15_spill]] %s4041_s23  ;;  %p3497_p9 = por %p535_p6, %p534_p4 }
  0x27   : > { %p678_p10 = pnand %p2762_p7, %p677_p8  ;;  %s515_s26 = ssub.s32 %s3334_s1, %s4041_s23 }
  0x28   : > { %s3982_s25 = scalar_select %p3497_p9, 1, 0 }
  0x29   : > { %s518_s21 = sadd.s32 1, %s3318_s29  ;;  %p516_p11 = scmp.eq.s32.totalorder %s515_s26, 0 }
  0x2a   : > { %3983 = sst [smem:[#allocation16_spill]] %s3982_s25  ;;  %681 = sbr.rel (%p678_p10) target bundleno = 2255 (0x8cf), region = 92 }
  0x2b   : > { %s3505_s2 = scalar_select %p516_p11, %s3318_s29, %s518_s21  }
  0x2d   : > { %3984 = sst [smem:[#allocation17_spill]] %s3505_s2 }
  0x2f   : > { %s3940_s22 = sand.u32 1, %s3314_s28   ;;  %p796_p12 = scmp.lt.s32.totalorder %s3326_s0, 1 }
  0x30   : > { %s2763_s19 = sshll.u32 %s3940_s22, 3  ;;  %p803_p13 = scmp.lt.s32.totalorder %s3322_s30, 1 }
  0x31   : > { %s3513_s27 = scalar_select %p796_p12, %s3326_s0, 1 }
  0x32   : > { %s3516_s23 = scalar_select %p803_p13, %s3322_s30, 1 }
  0x33   : > { %3985 = sst [smem:[#allocation18_spill]] %s3513_s27  ;;  %s2764_s26 = sshll.u32 %s3513_s27, 3 }
  0x34   : > { %s3987_s20 = sld [smem:[#allocation21_spill]]  ;;  %s2861_s24 = sshll.u32 %s3516_s23, 6 }
  0x35   : > { %s3988_s30 = sld [smem:[#allocation23_spill]]  ;;  %s2767_s16 = sshll.u32 %s3516_s23, 2 }
  0x36   : > { %s3989_s3 = sld [smem:[#allocation24_spill]]  ;;  %s2866_s14 = sshll.u32 %s3516_s23, 5 }
  0x37   : > { %s3991_s4 = sld [smem:[#allocation25_spill]]  ;;  %s3603_s13 = scalar_lea.vmem [#allocation2], %s2763_s19 }
  0x38   : > { %s3992_s5 = sld [smem:[#allocation26_spill]] }
  0x39   : > { %s3993_s6 = sld [smem:[#allocation27_spill]] }
  0x3a   : > { %s799_s18 = scalar_lea.vmem %s3987_s20, %s2764_s26  ;;  %s3994_s7 = sld [smem:[#allocation28_spill]] }
  0x3b   : > { %s3530_s17 = scalar_lea.vmem %s3988_s30, %s2861_s24  ;;  %s3995_s8 = sld [smem:[#allocation29_spill]] }
  0x3c   : > { %s3536_s1 = scalar_lea.vmem %s3989_s3, %s2767_s16  ;;  %s2864_s3 = sshll.u32 %s3516_s23, 4 }
  0x3d   : > { %3990 = sst [smem:[#allocation19_spill]] %s3536_s1  ;;  %s3541_s20 = scalar_lea.vmem %s3991_s4, %s2861_s24 }
  0x3e   : > { %s3546_s28 = scalar_lea.vmem %s3992_s5, %s2767_s16  ;;  %s3997_s10 = sld [smem:[#allocation31_spill]] }
  0x3f   : > { %s3551_s26 = scalar_lea.vmem %s3993_s6, %s2861_s24  ;;  %s4001_s22 = sld [smem:[#allocation34_spill]] }
  0x40   : > { %s3556_s29 = scalar_lea.vmem %s3994_s7, %s2767_s16  ;;  %s4003_s16 = sld [smem:[#allocation36_spill]] }
  0x41   : > { %s3562_s4 = scalar_lea.vmem %s3995_s8, %s2864_s3  ;;  %s3585_s8 = scalar_lea.vmem %s3927_s12, %s2866_s14 }
  0x42   : > { %s4004_s15 = sld [smem:[#allocation37_spill]] }
  0x43   : > { %s4005_s7 = sld [smem:[#allocation8_spill]] }
  0x44   : > { %s3571_s24 = scalar_lea.vmem %s3997_s10, %s2864_s3  ;;  %s4002_s10 = sld [smem:[#allocation35_spill]] }
  0x45   : > { %3998 = sst [smem:[#allocation20_spill]] %s3571_s24  ;;  %s856_s5 = scalar_lea.vmem %s4001_s22, %s3516_s23 }
  0x46   : > { %s862_s11 = scalar_lea.vmem %s4003_s16, %s3516_s23 }
  0x48   : > { %s865_s2 = scalar_lea.vmem %s4004_s15, %s3516_s23 }
  0x49   : > { %p2780_p0 = scmp.ne.s32.totalorder %s4005_s7, 0 }
  0x4a   : > { %s859_s24 = scalar_lea.vmem %s4002_s10, %s3516_s23 }
  0x4b   : > { %870 = sbr.rel (%p2780_p0) target bundleno = 82 (0x52), region = 96 }
  0x50   : > { %v871_v0 = vld [vmem:[%s799_s18] sm:$0xff]  ;;  %vm872_vm0 = vcmask 261120  }
  0x51   : > { %873 = vst.msk [vmem:[%s3603_s13] sm:$0xff] %vm872_vm0, %v871_v0 }
  0x52 PF: > { %v3196_v1 = vld [vmem:[%s3530_s17 + $0x8] sm:$0xff]   ;;  %v3340_v2 = vmov 0.0   ;;  %v3197_v3 = vld [vmem:[%s3530_s17 + $0x18] sm:$0xff]   ;;  %v3198_v4 = vld [vmem:[%s3530_s17] sm:$0xff]   ;;  %vm3341_vm1 = vmmov 0   ;;  %vm932_vm2 = vcmask 261120  }
  0x53   : > { %2935 = vmatprep.subr.bf16.mxu0 %v3340_v2  ;;  %2943 = vmatprep.subr.bf16.mxu1 %v3340_v2  ;;  %v3199_v5 = vld [vmem:[%s3530_s17 + $0x10] sm:$0xff]   ;;  %v3200_v8 = vld [vmem:[%s3530_s17 + $0x28] sm:$0xff]   ;;  %v3201_v9 = vld [vmem:[%s3530_s17 + $0x38] sm:$0xff]   ;;  %s4006_s9 = sld [smem:[#allocation19_spill]]  ;;  %vm1651_vm3 = vcmask 64512   ;;  %vm1891_vm4 = vcmask 1043456  }
  0x54   : > { %2936 = vmatpush3.bf16.msra.mxu0 %v3196_v1  ;;  %2939 = vmatprep.mubr.msk.bf16.mxu0 %vm3341_vm1, %v3340_v2  ;;  %v3202_v10 = vld [vmem:[%s3530_s17 + $0x20] sm:$0xff]   ;;  %v3203_v11 = vld [vmem:[%s3530_s17 + $0x30] sm:$0xff]   ;;  %v3204_v12 = vld [vmem:[%s3541_s20 + $0x8] sm:$0xff]   ;;  %s4007_s10 = sld [smem:[#allocation18_spill]]  ;;  %vm2419_vm5 = vcmask 523264  }
  0x55   : > { %2944 = vmatpush3.bf16.msra.mxu1 %v3197_v3  ;;  %2937 = vmatprep.subr.bf16.mxu0 %v3340_v2  ;;  %v3205_v13 = vld [vmem:[%s3541_s20 + $0x18] sm:$0xff]   ;;  %v3206_v14 = vld [vmem:[%s3541_s20] sm:$0xff]   ;;  %v3207_v15 = vld [vmem:[%s3541_s20 + $0x10] sm:$0xff]   ;;  %s4008_s19 = sld [smem:[#allocation22_spill]] }
  0x56   : > { %2945 = vmatprep.subr.bf16.mxu1 %v3340_v2  ;;  %2947 = vmatprep.mubr.msk.bf16.mxu1 %vm3341_vm1, %v3340_v2  ;;  %v3208_v16 = vld [vmem:[%s3541_s20 + $0x28] sm:$0xff]   ;;  %v3209_v17 = vld [vmem:[%s3541_s20 + $0x38] sm:$0xff]   ;;  %v3210_v18 = vld [vmem:[%s3541_s20 + $0x20] sm:$0xff]   ;;  %s4012_s22 = sld [smem:[#allocation20_spill]] }
  0x57   : > { %v3211_v19 = vld [vmem:[%s3541_s20 + $0x30] sm:$0xff]   ;;  %v3212_v20 = vld [vmem:[%s3551_s26 + $0x8] sm:$0xff]   ;;  %v3213_v21 = vld [vmem:[%s3551_s26] sm:$0xff]   ;;  %s4015_s30 = sld [smem:[#allocation32_spill]] }
  0x58   : > { %v3620_v6 = vld [vmem:[%s3603_s13] sm:$0xff]  ;;  %2938 = vmatpush3.bf16.msra.mxu0 %v3198_v4  ;;  %v3214_v22 = vld [vmem:[%s3551_s26 + $0x18] sm:$0xff]   ;;  %v3215_v23 = vld [vmem:[%s3551_s26 + $0x10] sm:$0xff]   ;;  %s4017_s15 = sld [smem:[#allocation33_spill]] }
  0x59   : > { %v3624_v7 = vpack.c.bf16 %v3620_v6, %v3620_v6  ;;  %2946 = vmatpush3.bf16.msra.mxu1 %v3199_v5  ;;  %2951 = vmatprep.subr.bf16.mxu0 %v3340_v2  ;;  %v3216_v24 = vld [vmem:[%s3551_s26 + $0x28] sm:$0xff]   ;;  %v3217_v25 = vld [vmem:[%s3551_s26 + $0x20] sm:$0xff]   ;;  %v3218_v26 = vld [vmem:[%s3551_s26 + $0x38] sm:$0xff]   ;;  %s4024_s14 = sld [smem:[#allocation38_spill]] }
  0x5a   : > { %2959 = vmatprep.subr.bf16.mxu1 %v3340_v2  ;;  %v3219_v27 = vld [vmem:[%s3551_s26 + $0x30] sm:$0xff]   ;;  %v2797_v43 = vld [vmem:[%s3546_s28] ss:$0 sm:$0xff]  ;;  %v2798_v45 = vld [vmem:[%s3546_s28 + $0x1] ss:$0 sm:$0xff] }
  0x5b   : > { %2940 = vmatmul.mubr.msk.bf16.vlgmr.msra.gmra.mxu0 %vm932_vm2, %v3624_v7  ;;  %v2781_v53 = vld [vmem:[%s4006_s9] ss:$0 sm:$0xff]  ;;  %v2782_v56 = vld [vmem:[%s4006_s9 + $0x1] ss:$0 sm:$0xff]  ;;  %v2799_v61 = vld [vmem:[%s3546_s28 + $0x2] ss:$0 sm:$0xff]  ;;  %s4009_s20 = scalar_lea.vmem %s4008_s19, %s4007_s10 }
  0x5c   : > { %2948 = vmatmul.mubr.msk.bf16.vlgmr.msra.gmra.mxu1 %vm932_vm2, %v3624_v7  ;;  %2952 = vmatpush3.bf16.msra.mxu0 %v3200_v8  ;;  %v2800_v0 = vld [vmem:[%s3546_s28 + $0x3] ss:$0 sm:$0xff]  ;;  %s4010_s28 = sld [smem:[#allocation30_spill]] }
  0x5d   : > { %2960 = vmatpush3.bf16.msra.mxu1 %v3201_v9  ;;  %2953 = vmatprep.subr.bf16.mxu0 %v3340_v2  ;;  %s4016_s0 = scalar_lea.vmem %s4015_s30, %s3516_s23 }
  0x5e   : > { %2961 = vmatprep.subr.bf16.mxu1 %v3340_v2  ;;  %2955 = vmatprep.mubr.msk.bf16.mxu0 %vm3341_vm1, %v3340_v2  ;;  %s4018_s7 = scalar_lea.vmem %s4017_s15, %s3516_s23 }
  0x5f   : > { %2963 = vmatprep.mubr.msk.bf16.mxu1 %vm3341_vm1, %v3340_v2 }
  0x60   : > { %2954 = vmatpush3.bf16.msra.mxu0 %v3202_v10 }
  0x61   : > { %2962 = vmatpush3.bf16.msra.mxu1 %v3203_v11  ;;  %2967 = vmatprep.subr.bf16.mxu0 %v3340_v2 }
  0x62   : > { %2975 = vmatprep.subr.bf16.mxu1 %v3340_v2  ;;  %s4011_s26 = scalar_lea.vmem %s4010_s28, %s3516_s23  ;;  %s3342_s23 = smov [#allocation2]  }
  0x63   : > { %2956 = vmatmul.mubr.msk.bf16.vlgmr.msra.gmra.mxu0 %vm932_vm2, %v3624_v7 }
  0x64   : > { %2964 = vmatmul.mubr.msk.bf16.vlgmr.msra.gmra.mxu1 %vm932_vm2, %v3624_v7  ;;  %2968 = vmatpush3.bf16.msra.mxu0 %v3204_v12 }
  0x65   : > { %2976 = vmatpush3.bf16.msra.mxu1 %v3205_v13  ;;  %2969 = vmatprep.subr.bf16.mxu0 %v3340_v2  ;;  %v2783_v13 = vld [vmem:[%s4006_s9 + $0x2] ss:$0 sm:$0xff] }
  0x66   : > { %2977 = vmatprep.subr.bf16.mxu1 %v3340_v2  ;;  %2971 = vmatprep.mubr.msk.bf16.mxu0 %vm3341_vm1, %v3340_v2 }
  0x67   : > { %2979 = vmatprep.mubr.msk.bf16.mxu1 %vm3341_vm1, %v3340_v2 }
  0x68   : > { %2970 = vmatpush3.bf16.msra.mxu0 %v3206_v14 }
  0x69   : > { %2978 = vmatpush3.bf16.msra.mxu1 %v3207_v15  ;;  %2983 = vmatprep.subr.bf16.mxu0 %v3340_v2 }
  0x6a   : > { %2991 = vmatprep.subr.bf16.mxu1 %v3340_v2 }
  0x6b   : > { %2972 = vmatmul.mubr.msk.bf16.vlgmr.msra.gmra.mxu0 %vm932_vm2, %v3624_v7 }
  0x6c   : > { %2980 = vmatmul.mubr.msk.bf16.vlgmr.msra.gmra.mxu1 %vm932_vm2, %v3624_v7  ;;  %2984 = vmatpush3.bf16.msra.mxu0 %v3208_v16  ;;  %v2784_v16 = vld [vmem:[%s4006_s9 + $0x3] ss:$0 sm:$0xff]  ;;  %s4020_s9 = sld [smem:[#allocation6_spill]] }
  0x6d   : > { %2992 = vmatpush3.bf16.msra.mxu1 %v3209_v17  ;;  %2985 = vmatprep.subr.bf16.mxu0 %v3340_v2 }
  0x6e   : > { %2993 = vmatprep.subr.bf16.mxu1 %v3340_v2  ;;  %2987 = vmatprep.mubr.msk.bf16.mxu0 %vm3341_vm1, %v3340_v2 }
  0x6f   : > { %2995 = vmatprep.mubr.msk.bf16.mxu1 %vm3341_vm1, %v3340_v2 }
  0x70   : > { %2986 = vmatpush3.bf16.msra.mxu0 %v3210_v18 }
  0x71   : > { %2994 = vmatpush3.bf16.msra.mxu1 %v3211_v19  ;;  %2999 = vmatprep.subr.bf16.mxu0 %v3340_v2 }
  0x72   : > { %3007 = vmatprep.subr.bf16.mxu1 %v3340_v2  ;;  %s4025_s27 = sand.u32 1, %s4020_s9  }
  0x73   : > { %2988 = vmatmul.mubr.msk.bf16.vlgmr.msra.gmra.mxu0 %vm932_vm2, %v3624_v7  ;;  %s2495_s25 = scalar_lea.sflag [#allocation3], %s4025_s27 }
  0x74   : > { %2996 = vmatmul.mubr.msk.bf16.vlgmr.msra.gmra.mxu1 %vm932_vm2, %v3624_v7  ;;  %3003 = vmatprep.mubr.msk.bf16.mxu0 %vm3341_vm1, %v3340_v2 }
  0x75   : > { %3011 = vmatprep.mubr.msk.bf16.mxu1 %vm3341_vm1, %v3340_v2  ;;  %3000 = vmatpush3.bf16.msra.mxu0 %v3212_v20 }
  0x76   : > { %3001 = vmatprep.subr.bf16.mxu0 %v3340_v2  ;;  %3008 = vmatpush3.bf16.msra.mxu1 %v3214_v22 }
  0x77   : > { %3009 = vmatprep.subr.bf16.mxu1 %v3340_v2 }
  0x79   : > { %3002 = vmatpush3.bf16.msra.mxu0 %v3213_v21 }
  0x7a   : > { %3015 = vmatprep.subr.bf16.mxu0 %v3340_v2  ;;  %3010 = vmatpush3.bf16.msra.mxu1 %v3215_v23 }
  0x7b   : > { %3023 = vmatprep.subr.bf16.mxu1 %v3340_v2 }
  0x7c   : > { %3004 = vmatmul.mubr.msk.bf16.vlgmr.msra.gmra.mxu0 %vm932_vm2, %v3624_v7 }
  0x7d   : > { %3016 = vmatpush3.bf16.msra.mxu0 %v3216_v24  ;;  %3019 = vmatprep.mubr.msk.bf16.mxu0 %vm3341_vm1, %v3340_v2 }
  0x7e   : > { %3017 = vmatprep.subr.bf16.mxu0 %v3340_v2  ;;  %3012 = vmatmul.mubr.msk.bf16.vlgmr.msra.gmra.mxu1 %vm932_vm2, %v3624_v7 }
  0x7f   : > { %3024 = vmatpush3.bf16.msra.mxu1 %v3218_v26  ;;  %3027 = vmatprep.mubr.msk.bf16.mxu1 %vm3341_vm1, %v3340_v2  ;;  %v2813_v26 = vld [vmem:[%s3556_s29] ss:$0 sm:$0xff] }
  0x80   : > { %3025 = vmatprep.subr.bf16.mxu1 %v3340_v2 }
  0x81   : > { %3018 = vmatpush3.bf16.msra.mxu0 %v3217_v25 }
  0x82   : > { %3031 = vmatprep.subr.bf16.mxu0 %v3340_v2 }
  0x83   : > { %3026 = vmatpush3.bf16.msra.mxu1 %v3219_v27 }
  0x84   : > { %3020 = vmatmul.mubr.msk.bf16.vlgmr.msra.gmra.mxu0 %vm932_vm2, %v3624_v7  ;;  %3037 = vmatprep.subr.bf16.mxu1 %v3340_v2 }
  0x85   : > { %3033 = vmatprep.mubr.msk.bf16.mxu0 %vm3341_vm1, %v3340_v2 }
  0x86   : > { %3028 = vmatmul.mubr.msk.bf16.vlgmr.msra.gmra.mxu1 %vm932_vm2, %v3624_v7 }
  0x87   : > { %3039 = vmatprep.mubr.msk.bf16.mxu1 %vm3341_vm1, %v3340_v2 }
 0x11b   : > { %v970_v28 = vpop.f32.mrf.mxu0 }
 0x11c   : > { %v1022_v29 = vpop.f32.mrf.mxu1  ;;  %v971_v62 = vadd.f32 %v2781_v53, %v970_v28 }
 0x11d   : > { %v2941_v30 = vpop.f32.mrf.mxu0  ;;  %v1023_v1 = vadd.f32 %v2782_v56, %v1022_v29 }
 0x11e   : > { %v2949_v31 = vpop.f32.mrf.mxu1  ;;  %v1636_v9 = vpack.c.bf16 %v971_v62, %v971_v62  ;;  %v2814_v30 = vld [vmem:[%s3556_s29 + $0x1] ss:$0 sm:$0xff] }
 0x11f   : > { %v973_v32 = vpop.f32.mrf.mxu0  ;;  %v1637_v12 = vpack.c.bf16 %v1023_v1, %v1023_v1 }
 0x120   : > { %v1025_v33 = vpop.f32.mrf.mxu1 }
 0x121   : > { %v2942_v34 = vpop.f32.mrf.mxu0 }
 0x122   : > { %v2950_v35 = vpop.f32.mrf.mxu1 }
 0x123   : > { %v1074_v36 = vpop.f32.mrf.mxu0 }
 0x124   : > { %v1126_v37 = vpop.f32.mrf.mxu1  ;;  %v1075_v21 = vadd.f32 %v2783_v13, %v1074_v36 }
 0x125   : > { %v2957_v38 = vpop.f32.mrf.mxu0  ;;  %v1127_v23 = vadd.f32 %v2784_v16, %v1126_v37 }
 0x126   : > { %v2965_v39 = vpop.f32.mrf.mxu1  ;;  %v1638_v24 = vpack.c.bf16 %v1075_v21, %v1075_v21 }
 0x127   : > { %v1077_v40 = vpop.f32.mrf.mxu0  ;;  %v1639_v25 = vpack.c.bf16 %v1127_v23, %v1127_v23 }
 0x128   : > { %v1129_v41 = vpop.f32.mrf.mxu1 }
 0x129   : > { %v2958_v42 = vpop.f32.mrf.mxu0 }
 0x12a   : > { %v2966_v44 = vpop.f32.mrf.mxu1 }
 0x12b   : > { %v1222_v46 = vpop.f32.mrf.mxu0 }
 0x12c   : > { %v1223_v47 = vadd.f32 %v2797_v43, %v1222_v46  ;;  %v1274_v48 = vpop.f32.mrf.mxu1 }
 0x12d   : > { %v1275_v49 = vadd.f32 %v2798_v45, %v1274_v48  ;;  %v2973_v50 = vpop.f32.mrf.mxu0 }
 0x12e   : > { %v1640_v51 = vpack.c.bf16 %v1223_v47, %v1223_v47  ;;  %v2981_v52 = vpop.f32.mrf.mxu1  ;;  %v2829_v50 = vld [vmem:[%s4009_s20] ss:$0 sm:$0xff] }
 0x12f   : > { %v1641_v54 = vpack.c.bf16 %v1275_v49, %v1275_v49  ;;  %v1225_v55 = vpop.f32.mrf.mxu0 }
 0x130   : > { %v1656_v57 = vsel %vm1651_vm3, %v1640_v51, 0  ;;  %v1277_v58 = vpop.f32.mrf.mxu1 }
 0x131   : > { %v1702_v59 = vsel %vm1651_vm3, %v1641_v54, 0  ;;  %v2974_v60 = vpop.f32.mrf.mxu0  ;;  %3032 = vmatpush3.bf16.xpose.msra.mxu0 %v1656_v57 }
 0x132   : > { %v2982_v63 = vpop.f32.mrf.mxu1  ;;  %3038 = vmatpush3.bf16.xpose.msra.mxu1 %v1702_v59  ;;  %3043 = vmatprep.subr.bf16.mxu0 %v3340_v2 }
 0x133   : > { %v1326_v3 = vpop.f32.mrf.mxu0  ;;  %3049 = vmatprep.subr.bf16.mxu1 %v3340_v2 }
 0x134   : > { %v1327_v4 = vadd.f32 %v2799_v61, %v1326_v3  ;;  %v1378_v5 = vpop.f32.mrf.mxu1 }
 0x135   : > { %v1379_v7 = vadd.f32 %v2800_v0, %v1378_v5  ;;  %v2989_v8 = vpop.f32.mrf.mxu0 }
 0x136   : > { %v1642_v10 = vpack.c.bf16 %v1327_v4, %v1327_v4  ;;  %v2997_v11 = vpop.f32.mrf.mxu1 }
 0x137   : > { %v1643_v14 = vpack.c.bf16 %v1379_v7, %v1379_v7  ;;  %v1329_v15 = vpop.f32.mrf.mxu0 }
 0x138   : > { %v1748_v17 = vsel %vm1651_vm3, %v1642_v10, 0  ;;  %v1381_v18 = vpop.f32.mrf.mxu1  ;;  %3034 = vmatmul.mubr.msk.bf16.vlgmr.msra.gmra.mxu0 %vm1651_vm3, %v1636_v9 }
 0x139   : > { %v1794_v19 = vsel %vm1651_vm3, %v1643_v14, 0  ;;  %3040 = vmatmul.mubr.msk.bf16.vlgmr.msra.gmra.mxu1 %vm1651_vm3, %v1637_v12  ;;  %v2990_v20 = vpop.f32.mrf.mxu0  ;;  %3044 = vmatpush3.bf16.xpose.msra.mxu0 %v1748_v17 }
 0x13a   : > { %v2998_v22 = vpop.f32.mrf.mxu1  ;;  %3050 = vmatpush3.bf16.xpose.msra.mxu1 %v1794_v19  ;;  %3045 = vmatprep.mubr.msk.bf16.mxu0 %vm3341_vm1, %v3340_v2 }
 0x13b   : > { %3051 = vmatprep.mubr.msk.bf16.mxu1 %vm3341_vm1, %v3340_v2  ;;  %3055 = vmatprep.subr.bf16.mxu0 %v3340_v2 }
 0x13c   : > { %3061 = vmatprep.subr.bf16.mxu1 %v3340_v2  ;;  %v1474_v27 = vpop.f32.mrf.mxu0 }
 0x13d   : > { %v1475_v28 = vadd.f32 %v2813_v26, %v1474_v27 }
 0x13e   : > { %v3005_v29 = vpop.f32.mrf.mxu0  ;;  %v1526_v33 = vpop.f32.mrf.mxu1 }
 0x13f   : > { %v1884_v31 = vpack.c.bf16 %v1475_v28, %v1475_v28  ;;  %v1527_v35 = vadd.f32 %v2814_v30, %v1526_v33 }
 0x140   : > { %3046 = vmatmul.mubr.msk.bf16.vlgmr.msra.gmra.mxu0 %vm1651_vm3, %v1638_v24  ;;  %v1477_v32 = vpop.f32.mrf.mxu0  ;;  %v3013_v37 = vpop.f32.mrf.mxu1 }
 0x141   : > { %3052 = vmatmul.mubr.msk.bf16.vlgmr.msra.gmra.mxu1 %vm1651_vm3, %v1639_v25  ;;  %3057 = vmatprep.mubr.msk.bf16.mxu0 %vm3341_vm1, %v3340_v2  ;;  %v1893_v34 = vsel %vm1891_vm4, %v1884_v31, 0  ;;  %v1885_v38 = vpack.c.bf16 %v1527_v35, %v1527_v35  ;;  %v2815_v35 = vld [vmem:[%s3556_s29 + $0x2] ss:$0 sm:$0xff] }
 0x142   : > { %3063 = vmatprep.mubr.msk.bf16.mxu1 %vm3341_vm1, %v3340_v2  ;;  %v3006_v36 = vpop.f32.mrf.mxu0  ;;  %3056 = vmatpush3.bf16.msra.mxu0 %v1893_v34  ;;  %v1529_v39 = vpop.f32.mrf.mxu1 }
 0x143   : > { %3067 = vmatprep.subr.bf16.mxu0 %v3340_v2  ;;  %v1939_v41 = vsel %vm1891_vm4, %v1885_v38, 0  ;;  %v2816_v38 = vld [vmem:[%s3556_s29 + $0x3] ss:$0 sm:$0xff] }
 0x144   : > { %v3748_v40 = vpop.f32.mrf.mxu0  ;;  %v3014_v42 = vpop.f32.mrf.mxu1  ;;  %3062 = vmatpush3.bf16.msra.mxu1 %v1939_v41 }
 0x145   : > { %3073 = vmatprep.subr.bf16.mxu1 %v3340_v2  ;;  %v1579_v37 = vadd.f32 %v2815_v35, %v3748_v40 }
 0x146   : > { %v3021_v43 = vpop.f32.mrf.mxu0  ;;  %v3752_v45 = vpop.f32.mrf.mxu1 }
 0x147   : > { %v1886_v42 = vpack.c.bf16 %v1579_v37, %v1579_v37  ;;  %v1631_v43 = vadd.f32 %v2816_v38, %v3752_v45 }
 0x148   : > { %v1581_v44 = vpop.f32.mrf.mxu0  ;;  %v3029_v47 = vpop.f32.mrf.mxu1 }
 0x14a   : > { %v3022_v46 = vpop.f32.mrf.mxu0  ;;  %v1633_v48 = vpop.f32.mrf.mxu1 }
 0x14b   : > { %v1985_v48 = vsel %vm1891_vm4, %v1886_v42, 0  ;;  %v2842_v42 = vld [vmem:[%s4011_s26] ss:$0 sm:$0xff]  ;;  %s2508_s26 = sshll.u32 %s3603_s13, 4  ;;  %s2509_s26 = int_to_ptr.vmem [resolvable:$true] %s2508_s26 }
 0x14c   : > { %v3030_v49 = vpop.f32.mrf.mxu1 }
 0x14d   : > { %v1887_v49 = vpack.c.bf16 %v1631_v43, %v1631_v43 }
 0x14f   : > { %v2031_v45 = vsel %vm1891_vm4, %v1887_v49, 0 }
 0x1f8   : > { %v1692_v51 = vpop.f32.mrf.mxu0 }
 0x1f9   : > { %v1693_v52 = vadd.f32 %v2829_v50, %v1692_v51  ;;  %v1738_v53 = vpop.f32.mrf.mxu1 }
 0x1fa   : > { %v3035_v54 = vpop.f32.mrf.mxu0  ;;  %v1739_v55 = vadd.f32 %v2829_v50, %v1738_v53 }
 0x1fb   : > { %v3041_v56 = vpop.f32.mrf.mxu1  ;;  %v1836_v57 = vsel %vm1651_vm3, %v1693_v52, -inf }
 0x1fc   : > { %1837 = vmax.xlane.f32.xlu0 %v1836_v57  ;;  %v1695_v58 = vpop.f32.mrf.mxu0  ;;  %v1839_v62 = vsel %vm1651_vm3, %v1739_v55, -inf }
 0x1fd   : > { %v1741_v59 = vpop.f32.mrf.mxu1 }
 0x1fe   : > { %v3036_v60 = vpop.f32.mrf.mxu0  ;;  %v2078_v59 = vld [vmem:[%s3562_s4 + $0x4] sm:$0xf] }
 0x1ff   : > { %v3042_v61 = vpop.f32.mrf.mxu1  ;;  %v2131_v60 = vsel %vm1891_vm4, %v2078_v59, 0 }
 0x200   : > { %1840 = vmax.xlane.f32.xlu0 %v1839_v62  ;;  %v1784_v63 = vpop.f32.mrf.mxu0  ;;  %v2079_v61 = vld [vmem:[%s3562_s4 + $0x8] sm:$0xf] }
 0x201   : > { %v1830_v0 = vpop.f32.mrf.mxu1  ;;  %v1785_v1 = vadd.f32 %v2829_v50, %v1784_v63 }
 0x202   : > { %v3047_v3 = vpop.f32.mrf.mxu0  ;;  %v1831_v4 = vadd.f32 %v2829_v50, %v1830_v0  ;;  %v2177_v0 = vsel %vm1891_vm4, %v2079_v61, 0 }
 0x203   : > { %v3053_v5 = vpop.f32.mrf.mxu1  ;;  %v1842_v7 = vsel %vm1651_vm3, %v1785_v1, -inf  ;;  %v2080_v3 = vld [vmem:[%s3562_s4 + $0xc] sm:$0xf] }
 0x204   : > { %1843 = vmax.xlane.f32.xlu1 %v1842_v7  ;;  %v1787_v8 = vpop.f32.mrf.mxu0  ;;  %v1845_v12 = vsel %vm1651_vm3, %v1831_v4, -inf }
 0x205   : > { %v1833_v9 = vpop.f32.mrf.mxu1  ;;  %v2223_v8 = vsel %vm1891_vm4, %v2080_v3, 0 }
 0x206   : > { %v3048_v10 = vpop.f32.mrf.mxu0 }
 0x207   : > { %v3054_v11 = vpop.f32.mrf.mxu1 }
 0x208   : > { %1846 = vmax.xlane.f32.xlu1 %v1845_v12 }
 0x285   : > { %v1838_v13 = vpop.xlane.xlu0 %1837 }
 0x286   : > { %v1848_v14 = vsub.f32 %v1693_v52, %v1838_v13  ;;  %v2077_v52 = vld [vmem:[%s3562_s4] sm:$0xf] }
 0x288   : > { %v1852_v15 = vmul.f32 1.442695, %v1848_v14 }
 0x289   : > { %v1841_v16 = vpop.xlane.xlu0 %1840 }
 0x28a   : > { %3226 = vpow2.f32 %v1852_v15  ;;  %v1849_v17 = vsub.f32 %v1739_v55, %v1841_v16  ;;  %v2085_v55 = vsel %vm1891_vm4, %v2077_v52, 0 }
 0x28c   : > { %v1854_v18 = vmul.f32 1.442695, %v1849_v17 }
 0x28d   : > { %v1844_v19 = vpop.xlane.xlu1 %1843 }
 0x28e   : > { %3228 = vpow2.f32 %v1854_v18  ;;  %v1850_v20 = vsub.f32 %v1785_v1, %v1844_v19 }
 0x290   : > { %v1856_v21 = vmul.f32 1.442695, %v1850_v20 }
 0x291   : > { %v1847_v22 = vpop.xlane.xlu1 %1846 }
 0x292   : > { %3230 = vpow2.f32 %v1856_v21  ;;  %v1851_v23 = vsub.f32 %v1831_v4, %v1847_v22 }
 0x294   : > { %v1858_v24 = vmul.f32 1.442695, %v1851_v23 }
 0x296   : > { %3232 = vpow2.f32 %v1858_v24 }
 0x297   : > { %v3227_v25 = vpop.eup %3226 }
 0x298   : > { %v1860_v26 = vsel %vm1651_vm3, %v3227_v25, 0.0 }
 0x299   : > { %1861 = vadd.xlane.f32.xlu0 %v1860_v26 }
 0x29b   : > { %v3229_v27 = vpop.eup %3228 }
 0x29c   : > { %v1863_v28 = vsel %vm1651_vm3, %v3229_v27, 0.0 }
 0x29d   : > { %1864 = vadd.xlane.f32.xlu1 %v1863_v28 }
 0x29f   : > { %v3231_v29 = vpop.eup %3230 }
 0x2a0   : > { %v1866_v30 = vsel %vm1651_vm3, %v3231_v29, 0.0 }
 0x2a1   : > { %1867 = vadd.xlane.f32.xlu0 %v1866_v30 }
 0x2a3   : > { %v3233_v31 = vpop.eup %3232 }
 0x2a4   : > { %v1869_v32 = vsel %vm1651_vm3, %v3233_v31, 0.0 }
 0x2a5   : > { %1870 = vadd.xlane.f32.xlu1 %v1869_v32 }
 0x322   : > { %v1862_v33 = vpop.xlane.xlu0 %1861 }
 0x323   : > { %3234 = vrcp.f32 %v1862_v33 }
 0x326   : > { %v1865_v34 = vpop.xlane.xlu1 %1864 }
 0x327   : > { %3236 = vrcp.f32 %v1865_v34 }
 0x32a   : > { %v1868_v36 = vpop.xlane.xlu0 %1867 }
 0x32b   : > { %3238 = vrcp.f32 %v1868_v36 }
 0x32e   : > { %v1871_v39 = vpop.xlane.xlu1 %1870 }
 0x32f   : > { %3240 = vrcp.f32 %v1871_v39 }
 0x330   : > { %v3235_v41 = vpop.eup %3234 }
 0x331   : > { %v1876_v44 = vmul.f32 %v3235_v41, %v3227_v25 }
 0x333   : > { %v1880_v46 = vpack.c.bf16 %v1876_v44, %v1876_v44 }
 0x334   : > { %v3237_v47 = vpop.eup %3236 }
 0x335   : > { %3058 = vmatmul.mubr.msk.bf16.vlgmr.msra.gmra.mxu0 %vm1651_vm3, %v1880_v46  ;;  %v1877_v50 = vmul.f32 %v3237_v47, %v3229_v27 }
 0x336   : > { %3068 = vmatpush3.bf16.msra.mxu0 %v1985_v48  ;;  %3069 = vmatprep.mubr.msk.bf16.mxu0 %vm3341_vm1, %v3340_v2 }
 0x337   : > { %v1881_v40 = vpack.c.bf16 %v1877_v50, %v1877_v50  ;;  %3079 = vmatprep.subr.bf16.mxu0 %v3340_v2 }
 0x338   : > { %v3239_v51 = vpop.eup %3238 }
 0x339   : > { %3064 = vmatmul.mubr.msk.bf16.vlgmr.msra.gmra.mxu1 %vm1651_vm3, %v1881_v40  ;;  %v1878_v53 = vmul.f32 %v3239_v51, %v3231_v29 }
 0x33a   : > { %3074 = vmatpush3.bf16.msra.mxu1 %v2031_v45  ;;  %3075 = vmatprep.mubr.msk.bf16.mxu1 %vm3341_vm1, %v3340_v2 }
 0x33b   : > { %v1882_v54 = vpack.c.bf16 %v1878_v53, %v1878_v53  ;;  %3085 = vmatprep.subr.bf16.mxu1 %v3340_v2 }
 0x33c   : > { %v3241_v56 = vpop.eup %3240 }
 0x33d   : > { %3070 = vmatmul.mubr.msk.bf16.vlgmr.msra.gmra.mxu0 %vm1651_vm3, %v1882_v54  ;;  %v1879_v57 = vmul.f32 %v3241_v56, %v3233_v31  ;;  %v3221_v56 = vld [vmem:[%s4012_s22] sm:$0xff]  }
 0x33e   : > { %3080 = vmatpush3.bf16.msra.mxu0 %v2085_v55  ;;  %3081 = vmatprep.mubr.msk.bf16.mxu0 %vm3341_vm1, %v3340_v2  ;;  %v3220_v55 = vld [vmem:[%s4012_s22 + $0x8] sm:$0xff]  }
 0x33f   : > { %v1883_v58 = vpack.c.bf16 %v1879_v57, %v1879_v57  ;;  %3091 = vmatprep.subr.bf16.mxu0 %v3340_v2  ;;  %v3223_v57 = vld [vmem:[%s3585_s8 + $0x10] sm:$0xff]  }
 0x341   : > { %3076 = vmatmul.mubr.msk.bf16.vlgmr.msra.gmra.mxu1 %vm1651_vm3, %v1883_v58 }
 0x342   : > { %3087 = vmatprep.mubr.msk.bf16.mxu1 %vm3341_vm1, %v3340_v2  ;;  %3086 = vmatpush3.bf16.msra.mxu1 %v2131_v60 }
 0x343   : > { %3097 = vmatprep.subr.bf16.mxu1 %v3340_v2 }
 0x3f5   : > { %v1929_v62 = vpop.f32.mrf.mxu0 }
 0x3f6   : > { %v2073_v63 = vpack.c.bf16 %v1929_v62, %v1929_v62  ;;  %v2843_v62 = vld [vmem:[%s856_s5] ss:$0 sm:$0xff] }
 0x3f7   : > { %v3059_v1 = vpop.f32.mrf.mxu0 }
 0x3f8   : > { %3082 = vmatmul.mubr.msk.bf16.vlgmr.msra.gmra.mxu0 %vm1651_vm3, %v2073_v63 }
 0x3f9   : > { %v1932_v4 = vpop.f32.mrf.mxu0  ;;  %v1975_v5 = vpop.f32.mrf.mxu1  ;;  %3092 = vmatpush3.bf16.msra.mxu0 %v2177_v0  ;;  %3093 = vmatprep.mubr.msk.bf16.mxu0 %vm3341_vm1, %v3340_v2  ;;  %v2844_v0 = vld [vmem:[%s859_s24] ss:$0 sm:$0xff] }
 0x3fa   : > { %v2074_v7 = vpack.c.bf16 %v1975_v5, %v1975_v5  ;;  %3103 = vmatprep.subr.bf16.mxu0 %v3340_v2  ;;  %v3224_v5 = vld [vmem:[%s3585_s8 + $0x8] sm:$0xff]  }
 0x3fb   : > { %v3060_v9 = vpop.f32.mrf.mxu0  ;;  %v3065_v10 = vpop.f32.mrf.mxu1 }
 0x3fc   : > { %3088 = vmatmul.mubr.msk.bf16.vlgmr.msra.gmra.mxu1 %vm1651_vm3, %v2074_v7  ;;  %v3225_v7 = vld [vmem:[%s3585_s8] sm:$0xff]  }
 0x3fd   : > { %v1978_v11 = vpop.f32.mrf.mxu1  ;;  %v2021_v12 = vpop.f32.mrf.mxu0  ;;  %3098 = vmatpush3.bf16.msra.mxu1 %v2223_v8  ;;  %3099 = vmatprep.mubr.msk.bf16.mxu1 %vm3341_vm1, %v3340_v2  ;;  %v2845_v8 = vld [vmem:[%s4016_s0] ss:$0 sm:$0xff] }
 0x3fe   : > { %v2075_v13 = vpack.c.bf16 %v2021_v12, %v2021_v12  ;;  %3111 = vmatprep.subr.bf16.mxu1 %v3340_v2 }
 0x3ff   : > { %v3066_v14 = vpop.f32.mrf.mxu1  ;;  %v3071_v15 = vpop.f32.mrf.mxu0 }
 0x400   : > { %3094 = vmatmul.mubr.msk.bf16.vlgmr.msra.gmra.mxu0 %vm1651_vm3, %v2075_v13 }
 0x401   : > { %v2024_v16 = vpop.f32.mrf.mxu0  ;;  %v2067_v17 = vpop.f32.mrf.mxu1  ;;  %3107 = vmatprep.mubr.msk.bf16.mxu0 %vm3341_vm1, %v3340_v2  ;;  %3104 = vmatpush3.bf16.msra.mxu0 %v3220_v55 }
 0x402   : > { %v2076_v18 = vpack.c.bf16 %v2067_v17, %v2067_v17  ;;  %3105 = vmatprep.subr.bf16.mxu0 %v3340_v2 }
 0x403   : > { %v3072_v19 = vpop.f32.mrf.mxu0  ;;  %v3077_v20 = vpop.f32.mrf.mxu1 }
 0x404   : > { %3100 = vmatmul.mubr.msk.bf16.vlgmr.msra.gmra.mxu1 %vm1651_vm3, %v2076_v18 }
 0x405   : > { %v2070_v21 = vpop.f32.mrf.mxu1  ;;  %3119 = vmatprep.mubr.msk.bf16.mxu1 %vm3341_vm1, %v3340_v2  ;;  %3106 = vmatpush3.bf16.msra.mxu0 %v3221_v56 }
 0x407   : > { %v3078_v22 = vpop.f32.mrf.mxu1 }
 0x4b8   : > { %v2121_v23 = vpop.f32.mrf.mxu0 }
 0x4b9   : > { %v2265_v32 = vsel %vm932_vm2, %v2121_v23, 0.0 }
 0x4ba   : > { %v3083_v24 = vpop.f32.mrf.mxu0 }
 0x4bc   : > { %v2124_v25 = vpop.f32.mrf.mxu0  ;;  %v2167_v26 = vpop.f32.mrf.mxu1 }
 0x4bd   : > { %v2266_v29 = vsel %vm932_vm2, %v2167_v26, 0.0 }
 0x4be   : > { %v3084_v27 = vpop.f32.mrf.mxu0  ;;  %v3089_v28 = vpop.f32.mrf.mxu1  ;;  %v2267_v34 = vadd.f32 %v2266_v29, %v2265_v32  ;;  %v2855_v32 = vld [vmem:[%s862_s11] ss:$0 sm:$0xff]  ;;  %s3246_s11 = scalar_lea.vmem %s2509_s26, 128 }
 0x4bf   : > { %p3247_p1 = scmp.ne.s32.totalorder %s2509_s26, %s3246_s11 }
 0x4c0   : > { %v2170_v30 = vpop.f32.mrf.mxu1  ;;  %v2213_v31 = vpop.f32.mrf.mxu0 }
 0x4c1   : > { %v2268_v33 = vsel %vm932_vm2, %v2213_v31, 0.0  ;;  %p3248_p2 = pnand %p3247_p1, %p3487_p3 }
 0x4c2   : > { %v3090_v35 = vpop.f32.mrf.mxu1  ;;  %v3095_v36 = vpop.f32.mrf.mxu0  ;;  %v2269_v37 = vadd.f32 %v2268_v33, %v2267_v34  ;;  %v2856_v34 = vld [vmem:[%s865_s2] ss:$0 sm:$0xff]  ;;  %s3250_s2 = sshll.u32 %s3342_s23, 4  ;;  %s3251_s2 = int_to_ptr.vmem [resolvable:$false] %s3250_s2 }
 0x4c3   : > { %p3249_p4 = pneg %p3248_p2  ;;  %s3252_s3 = scalar_lea.vmem %s3251_s2, 256 }
 0x4c4   : > { %v2216_v38 = vpop.f32.mrf.mxu0  ;;  %v2259_v39 = vpop.f32.mrf.mxu1  ;;  %p3253_p5 = scmp.lt.s32.totalorder %s2509_s26, %s3251_s2  ;;  %p3254_p6 = scmp.lt.s32.totalorder %s3252_s3, %s3246_s11 }
 0x4c5   : > { %v2270_v41 = vsel %vm932_vm2, %v2259_v39, 0.0 }
 0x4c6   : > { %v2271_v43 = vadd.f32 %v2270_v41, %v2269_v37  ;;  %v3096_v44 = vpop.f32.mrf.mxu0  ;;  %v3101_v46 = vpop.f32.mrf.mxu1  ;;  %p3255_p7 = por %p3254_p6, %p3253_p5 }
 0x4c8   : > { %v2279_v47 = vadd.f32 %v2842_v42, %v2271_v43  ;;  %v2262_v48 = vpop.f32.mrf.mxu1  ;;  %p3256_p8 = pnand %p3255_p7, %p3249_p4 }
 0x4ca   : > { %v3102_v49 = vpop.f32.mrf.mxu1  ;;  %v2280_v50 = vadd.f32 %v2279_v47, %v3620_v6  ;;  %v3222_v6 = vld [vmem:[%s3585_s8 + $0x18] sm:$0xff]   ;;  %s4019_s8 = sld [smem:[#allocation9_spill]] }
 0x4cb   : > { %3112 = vmatpush3.bf16.msra.mxu1 %v3222_v6 }
 0x4cc   : > { %v2283_v40 = vsel %vm932_vm2, %v2280_v50, 0.0  ;;  %3113 = vmatprep.subr.bf16.mxu1 %v3340_v2 }
 0x4cd   : > { %2284 = vadd.xlane.f32.xlu0 %v2283_v40 }
 0x4cf   : > { %3114 = vmatpush3.bf16.msra.mxu1 %v3223_v57 }
 0x4d0   : > { %3115 = vmatprep.subr.bf16.mxu1 %v3340_v2  ;;  %s2858_s28 = sshll.u32 %s4019_s8, 7 }
 0x4d1   : > { %s2506_s21 = scalar_lea.hbm %s4024_s14, %s2858_s28 }
 0x4d3   : > { %3116 = vmatpush3.bf16.msra.mxu1 %v3224_v5 }
 0x4d4   : > { %3117 = vmatprep.subr.bf16.mxu1 %v3340_v2  ;;  %v2849_v2 = vld [vmem:[%s4018_s7] ss:$0 sm:$0xff] }
 0x4d7   : > { %3118 = vmatpush3.bf16.msra.mxu1 %v3225_v7 }
 0x556   : > { %v2285_v51 = vpop.xlane.xlu0 %2284 }
 0x557   : > { %v2287_v52 = vmul.f32 0.03125, %v2285_v51 }
 0x559   : > { %v2288_v45 = vsub.f32 %v2280_v50, %v2287_v52 }
 0x55b   : > { %v2289_v53 = vmul.f32 %v2288_v45, %v2288_v45 }
 0x55d   : > { %v2290_v54 = vsel %vm932_vm2, %v2289_v53, 0.0 }
 0x55e   : > { %2291 = vadd.xlane.f32.xlu1 %v2290_v54 }
 0x5e7   : > { %v2292_v58 = vpop.xlane.xlu1 %2291 }
 0x5e8   : > { %v2293_v59 = vmul.f32 0.03125, %v2292_v58 }
 0x5ea   : > { %v2294_v60 = vadd.f32 1e-05, %v2293_v59 }
 0x5ec   : > { %3242 = vrsqrt.f32 %v2294_v60 }
 0x5f9   : > { %v3243_v61 = vpop.eup %3242 }
 0x5fa   : > { %v2296_v63 = vmul.f32 %v3243_v61, %v2288_v45 }
 0x5fc   : > { %v2303_v1 = vmul.f32 %v2843_v62, %v2296_v63 }
 0x5fe   : > { %v2310_v3 = vadd.f32 %v2844_v0, %v2303_v1 }
 0x600   : > { %v2311_v4 = vpack.c.bf16 %v2310_v3, %v2310_v3 }
 0x602   : > { %3108 = vmatmul.mubr.msk.bf16.vlgmr.msra.gmra.mxu0 %vm932_vm2, %v2311_v4 }
 0x6c2   : > { %v2372_v9 = vpop.f32.mrf.mxu0 }
 0x6c3   : > { %v2373_v10 = vadd.f32 %v2845_v8, %v2372_v9 }
 0x6c4   : > { %v3109_v11 = vpop.f32.mrf.mxu0 }
 0x6c5   : > { %v2378_v12 = vmax.f32 %v2373_v10, 0.0 }
 0x6c6   : > { %v2375_v13 = vpop.f32.mrf.mxu0 }
 0x6c7   : > { %v2379_v14 = vpack.c.bf16 %v2378_v12, %v2378_v12 }
 0x6c8   : > { %v3110_v15 = vpop.f32.mrf.mxu0 }
 0x6c9   : > { %3120 = vmatmul.mubr.msk.bf16.vlgmr.msra.gmra.mxu1 %vm2419_vm5, %v2379_v14 }
 0x789   : > { %v2457_v16 = vpop.f32.mrf.mxu1 }
 0x78a   : > { %v2458_v17 = vadd.f32 %v2849_v2, %v2457_v16 }
 0x78b   : > { %v3121_v18 = vpop.f32.mrf.mxu1 }
 0x78c   : > { %v2463_v19 = vadd.f32 %v2458_v17, %v2310_v3 }
 0x78d   : > { %v2460_v20 = vpop.f32.mrf.mxu1 }
 0x78e   : > { %v2466_v21 = vsel %vm932_vm2, %v2463_v19, 0.0 }
 0x78f   : > { %2467 = vadd.xlane.f32.xlu0 %v2466_v21  ;;  %v3122_v22 = vpop.f32.mrf.mxu1 }
 0x818   : > { %v2468_v23 = vpop.xlane.xlu0 %2467 }
 0x819   : > { %v2469_v24 = vmul.f32 0.03125, %v2468_v23 }
 0x81b   : > { %v2470_v25 = vsub.f32 %v2463_v19, %v2469_v24 }
 0x81d   : > { %v2471_v26 = vmul.f32 %v2470_v25, %v2470_v25 }
 0x81f   : > { %v2472_v27 = vsel %vm932_vm2, %v2471_v26, 0.0 }
 0x820   : > { %2473 = vadd.xlane.f32.xlu1 %v2472_v27 }
 0x8a9   : > { %v2474_v28 = vpop.xlane.xlu1 %2473 }
 0x8aa   : > { %v2475_v29 = vmul.f32 0.03125, %v2474_v28 }
 0x8ac   : > { %v2476_v30 = vadd.f32 1e-05, %v2475_v29 }
 0x8ae   : > { %3244 = vrsqrt.f32 %v2476_v30 }
 0x8bb   : > { %v3245_v31 = vpop.eup %3244 }
 0x8bc   : > { %v2478_v33 = vmul.f32 %v3245_v31, %v2470_v25 }
 0x8be   : > { %v2485_v35 = vmul.f32 %v2855_v32, %v2478_v33 }
 0x8c0   : > { %v2492_v36 = vadd.f32 %v2856_v34, %v2485_v35 }
 0x8c2   : > { %2493 = vst.msk [vmem:[%s3603_s13] sm:$0xff] %vm932_vm2, %v2492_v36 }
 0x8c3   : > { %3259 = shalt.err (!%p3256_p8)
}
 0x8c4   : > { %s3260_s1 = scalar_lea.hbm %s2506_s21, 128  ;;  %s3264_s30 = scalar_lea.hbm %s4024_s14, 256 }
 0x8c5   : > { %p3261_p10 = scmp.ne.s32.totalorder %s2506_s21, %s3260_s1  ;;  %p3265_p13 = scmp.lt.s32.totalorder %s2506_s21, %s4024_s14 }
 0x8c6   : > { %p3266_p0 = scmp.lt.s32.totalorder %s3264_s30, %s3260_s1 }
 0x8c7   : > { %p3262_p11 = pnand %p3261_p10, %p3487_p3 }
 0x8c8   : > { %p3267_p1 = por %p3266_p0, %p3265_p13 }
 0x8c9   : > { %p3263_p12 = pneg %p3262_p11 }
 0x8cb   : > { %p3268_p2 = pnand %p3267_p1, %p3263_p12 }
 0x8cd   : > { %3271 = shalt.err (!%p3268_p2)
}
 0x8ce   : > { %3123 = dma.vmem_to_hbm [thread:$0]  (%p3487_p3), %s2509_s26, 128, %s2506_s21, %s2495_s25  }
 0x8cf PF: > { %s4026_s6 = sld [smem:[#allocation12_spill]] }
 0x8d0   : > { %s4027_s15 = sld [smem:[#allocation5_spill]] }
 0x8d5   : > { %p3129_p4 = scmp.ge.s32.totalorder %s4026_s6, 2 }
 0x8d6   : > { %s2520_s8 = sand.u32 1, %s4027_s15  }
 0x8d7   : > { %p3126_p5 = pnand %p3129_p4, %p3497_p9  ;;  %s2521_s9 = scalar_lea.sflag [#allocation3], %s2520_s8 }
 0x8d9   : > { %p3127_p6 = pneg %p3126_p5 }
 0x8db   : > { %3305 = dma.done.wait (%p3127_p6), %s2521_s9, 128  }
 0x8dc   : > { %3307 = vsyncadd (%p3127_p6), %s2521_s9, 4294967168  ;;  %s31_s20 = sadd.s32 1, %s4026_s6   ;;  %s4029_s27 = sld [smem:[#allocation6_spill]] }
 0x8dd   : > { %p28_p7 = scmp.ge.s32.totalorder %s31_s20, 6   ;;  %s4030_s28 = sld [smem:[#allocation7_spill]] }
 0x8de   : > { %s4031_s29 = sld [smem:[#allocation17_spill]] }
 0x8df   : > { %s4032_s30 = sld [smem:[#allocation10_spill]]  ;;  %30 = sbr.rel (!%p28_p7) target bundleno = 24 (0x18), region = 182 }
 0x8e0   : > { %s4033_s0 = sld [smem:[#allocation11_spill]] }
 0x8e1   : > { %s4034_s19 = sld [smem:[#allocation13_spill]] }
 0x8e2   : > { %s4035_s1 = sld [smem:[#allocation15_spill]] }
 0x8e4   :  { %2526 = vsyncpa [#allocation3], 1 }
 0x8e5   :  { %2528 = vsyncpa [#allocation3 + $0x1], 1 }

</bundles_post_ra>
